<compile_context>
chip_gen: v7x
topology: tpu7x:2x2x1
jax: 0.10.0
libtpu: 0.0.40
codegen_flags: <defaults>
</compile_context>

<pallas_src>
import functools

import jax
import jax.numpy as jnp
from jax.experimental import pallas as pl
from jax.experimental.pallas import tpu as pltpu

NCLASS = 8
_COMPUTE_DTYPE = jnp.bfloat16


def _round_up(v, m):
    return ((v + m - 1) // m) * m


def _divisors(v):
    return [d for d in range(1, v + 1) if v % d == 0]


_HW = None


def _hw_params():
    """Per-generation knobs: 128-MiB-VMEM parts (v5e/v6e) get larger tiles and a high scoped-VMEM
    limit; 64-MiB-per-core parts (v7x) keep a tight double-buffered budget."""
    global _HW
    if _HW is None:
        try:
            cap = int(pltpu.get_tpu_info().vmem_capacity_bytes)
        except Exception:
            cap = 0
        if cap >= 96 * 1024 * 1024:
            _HW = dict(vmem_limit=80 * 1024 * 1024, ws_budget=48 * 1024 * 1024, row_cap=8192)
        else:
            _HW = dict(vmem_limit=32 * 1024 * 1024, ws_budget=18 * 1024 * 1024, row_cap=4096)
    return _HW


# --------------------------------------------------------------------------------- tiling plan ----
def _plan(n, h, w, cin, cout_p, out_bytes, fuse, force=None):
    """Pick the block layout for one conv.

    Path "image": each block is k whole images (no halo; row masks if k > 1).
    Path "halo":  each block is rh image rows of one image; the rows above/below come in through
                  two extra one-row BlockSpecs (requires W % 8 == 0).
    """
    hw = _hw_params()
    tn = 256 if (cout_p > 256 and cout_p % 256 == 0) else cout_p
    cout_tiles = cout_p // tn
    nh = n * h
    cin_l = _round_up(max(cin, 128), 128)      # lane-padded footprint estimates
    tn_l = _round_up(max(tn, 128), 128)

    def fits(m):
        if m > hw["row_cap"]:
            return False
        act = m * cin_l * 2
        halo = 2 * w * cin_l * 2
        wt = 9 * max(cin, 16) * tn_l * 2
        outb = m * tn_l * out_bytes
        add = m * tn_l * 2 if fuse else 0
        buf = _round_up(m + 2 * w + 2, 16) * cin_l * 2
        return 2 * (act + halo + outb + add) + 2 * wt + buf <= hw["ws_budget"]

    def prefer(cands, nblocks):
        cands = sorted(cands)
        best = cands[-1]
        if cout_tiles == 1:
            # keep >= 2 M-blocks so both v7x TensorCores get work
            multi = [c for c in cands if nblocks(c) >= 2]
            if multi:
                best = multi[-1]
        return best

    if force != "halo":
        cand = [k for k in _divisors(n)
                if ((k * h * w) % 8 == 0 or k == n) and fits(k * h * w)]
        if cand:
            k = prefer(cand, lambda c: n // c)
            return dict(path="image", m=k * h * w, tn=tn, grid_m=n // k, k=k, rh=0)
    if w % 8 == 0:
        cand = [rh for rh in _divisors(h) if (rh * w) % 8 == 0 and fits(rh * w)]
        if cand:
            rh = prefer(cand, lambda c: nh // c)
            return dict(path="halo", m=rh * w, tn=tn, grid_m=nh // rh, k=0, rh=rh)
    return None


# ------------------------------------------------------------------------------- Pallas kernel ----
def _conv9_kernel(*refs, width, height, rh, relu, fuse_avg, use_halo, row_mask):
    """Fused 3x3 conv (+folded-BN shift) (+ReLU) (+(x+d)/2 merge).

    Input refs:  center rows (M, Cin) [, up-halo (W, Cin), down-halo (W, Cin)],
                 weights (9, Cin, tn), shift (1, tn) [, add (M, tn)].
    Output ref:  (M, tn).  Scratch: (R, Cin) VMEM staging buffer.
    The 3x3 stencil is realised as nine statically-offset slices of the staging buffer feeding
    nine MXU matmuls accumulated in f32; image borders are handled by zeroed halo rows plus
    column (and, for multi-image blocks, row) masks on the partial sums.
    """
    if use_halo:
        xc_ref, xu_ref, xd_ref, w_ref, b_ref = refs[:5]
        rest = refs[5:]
    else:
        xc_ref, w_ref, b_ref = refs[:3]
        rest = refs[3:]
    add_ref = rest[0] if fuse_avg else None
    o_ref, buf_ref = rest[-2], rest[-1]

    m = xc_ref.shape[0]
    cin = xc_ref.shape[1]
    W = width
    cdt = buf_ref.dtype

    # ---- stage the vertically-extended block into VMEM (in-kernel im2col) ----
    buf_ref[0:1, :] = jnp.zeros((1, cin), cdt)
    if use_halo:
        row0 = pl.program_id(1) * rh
        buf_ref[pl.ds(1, W), :] = xu_ref[...]
        buf_ref[pl.ds(1 + W + m, W), :] = xd_ref[...]

        @pl.when(row0 % height == 0)
        def _():                                       # block starts at an image top
            buf_ref[pl.ds(1, W), :] = jnp.zeros((W, cin), cdt)

        @pl.when((row0 + rh) % height == 0)
        def _():                                       # block ends at an image bottom
            buf_ref[pl.ds(1 + W + m, W), :] = jnp.zeros((W, cin), cdt)
    else:
        zrow = jnp.zeros((W, cin), cdt)
        buf_ref[pl.ds(1, W), :] = zrow
        buf_ref[pl.ds(1 + W + m, W), :] = zrow
    buf_ref[pl.ds(1 + W, m), :] = xc_ref[...]
    tail = 1 + W + m + W
    r_buf = buf_ref.shape[0]
    buf_ref[pl.ds(tail, r_buf - tail), :] = jnp.zeros((r_buf - tail, cin), cdt)

    # ---- nine shifted taps -> MXU, partial sums grouped by horizontal offset ----
    col = jax.lax.broadcasted_iota(jnp.int32, (m, 1), 0) % W
    if row_mask:
        rowi = (jax.lax.broadcasted_iota(jnp.int32, (m, 1), 0) // W) % height
    parts = []
    for dx in range(3):
        s = None
        for dy in range(3):
            xt = buf_ref[pl.ds(dy * W + dx, m), :]
            part = jnp.dot(xt, w_ref[dy * 3 + dx], preferred_element_type=jnp.float32)
            if row_mask and dy == 0:
                part = jnp.where(rowi == 0, 0.0, part)
            elif row_mask and dy == 2:
                part = jnp.where(rowi == height - 1, 0.0, part)
            s = part if s is None else s + part
        parts.append(s)
    acc = parts[1]
    acc = acc + jnp.where(col == 0, 0.0, parts[0])
    acc = acc + jnp.where(col == W - 1, 0.0, parts[2])

    # ---- epilogue: folded-BN shift, ReLU, optional (x + d)/2 depth merge ----
    acc = acc + b_ref[...]
    if relu:
        acc = jnp.maximum(acc, 0.0)
    if fuse_avg:
        acc = (acc + add_ref[...].astype(jnp.float32)) * 0.5
    o_ref[...] = acc.astype(o_ref.dtype)


# --------------------------------------------------------------------------------- conv wrapper ----
def conv3x3(x, p, relu=True, fuse_add=None, out_dtype=None, _force_path=None):
    """Fused conv3x3 (+folded-BN shift) (+ReLU) (+ optional (.+d)/2 merge) on TPU."""
    n, h, w, cin = x.shape
    w9, shift = p["w9"], p["shift"]
    cin_pad, cout_p = w9.shape[1], w9.shape[2]
    out_dtype = _COMPUTE_DTYPE if out_dtype is None else out_dtype
    fuse = fuse_add is not None

    if cin_pad != cin:                                 # stems: 1/3 channels padded to 8
        x = jnp.pad(x, ((0, 0), (0, 0), (0, 0), (0, cin_pad - cin)))

    plan = _plan(n, h, w, cin_pad, cout_p, jnp.dtype(out_dtype).itemsize, fuse,
                 force=_force_path)
    if plan is None:
        if w % 8 == 0:
            raise ValueError(f"conv3x3: no feasible tiling for {(n, h, w, cin_pad, cout_p)}")
        # rare: large image whose width is not a sublane multiple -> pad W once, slice after
        wp = _round_up(w, 8)
        xp = jnp.pad(x, ((0, 0), (0, 0), (0, wp - w), (0, 0)))
        ap = jnp.pad(fuse_add, ((0, 0), (0, 0), (0, wp - w), (0, 0))) if fuse else None
        return conv3x3(xp, p, relu=relu, fuse_add=ap, out_dtype=out_dtype)[:, :, :w, :]

    m_blk, tn, grid_m, rh = plan["m"], plan["tn"], plan["grid_m"], plan["rh"]
    cout_tiles = cout_p // tn
    use_halo = plan["path"] == "halo"
    row_mask = plan["path"] == "image" and plan["k"] > 1
    nh = n * h
    nhw = n * h * w

    x2 = x.astype(_COMPUTE_DTYPE).reshape(nhw, cin_pad)
    inputs = [x2]
    in_specs = [pl.BlockSpec((m_blk, cin_pad), lambda j, i: (i, 0))]
    if use_halo:
        in_specs += [
            pl.BlockSpec((w, cin_pad), lambda j, i: (jnp.maximum(i * rh - 1, 0), 0)),
            pl.BlockSpec((w, cin_pad), lambda j, i: (jnp.minimum(i * rh + rh, nh - 1), 0)),
        ]
        inputs += [x2, x2]
    in_specs += [
        pl.BlockSpec((9, cin_pad, tn), lambda j, i: (0, 0, j)),
        pl.BlockSpec((1, tn), lambda j, i: (0, j)),
    ]
    inputs += [w9, shift]
    if fuse:
        in_specs.append(pl.BlockSpec((m_blk, tn), lambda j, i: (i, j)))
        inputs.append(fuse_add.astype(_COMPUTE_DTYPE).reshape(nhw, cout_p))

    kern = functools.partial(
        _conv9_kernel, width=w, height=h, rh=rh, relu=relu, fuse_avg=fuse,
        use_halo=use_halo, row_mask=row_mask)

    out = pl.pallas_call(
        kern,
        out_shape=jax.ShapeDtypeStruct((nhw, cout_p), out_dtype),
        grid=(cout_tiles, grid_m),                      # Cout tiles outer, M tiles inner
        in_specs=in_specs,
        out_specs=pl.BlockSpec((m_blk, tn), lambda j, i: (i, j)),
        scratch_shapes=[pltpu.VMEM((_round_up(m_blk + 2 * w + 2, 8), cin_pad), _COMPUTE_DTYPE)],
        compiler_params=pltpu.CompilerParams(
            dimension_semantics=("parallel", "parallel"),
            vmem_limit_bytes=_hw_params()["vmem_limit"]),
    )(*inputs)
    return out.reshape(n, h, w, cout_p)


def run_stage(x, stage, last_relu=True, fuse_avg_with=None, last_out_dtype=None):
    n = len(stage)
    for i, p in enumerate(stage):
        last = i == n - 1
        x = conv3x3(
            x, p,
            relu=last_relu if last else True,
            fuse_add=fuse_avg_with if last else None,
            out_dtype=last_out_dtype if last else None,
        )
    return x


# ------------------------------------------------------------------------- pool / unpool glue ----
def max_pool(x):
    n, h, w, c = x.shape
    return x.reshape(n, h // 2, 2, w // 2, 2, c).max(axis=(2, 4))


def max_pool_with_idx(x):
    """2x2/stride-2 max pool.  Returns pooled values and int8 argmax codes (first-max on ties),
    equivalent to PyTorch return_indices + MaxUnpool2d semantics but 8x cheaper than a one-hot
    full-resolution mask."""
    n, h, w, c = x.shape
    win = x.reshape(n, h // 2, 2, w // 2, 2, c).transpose(0, 1, 3, 2, 4, 5)
    win = win.reshape(n, h // 2, w // 2, 4, c)
    pooled = win.max(axis=3)
    idx = jnp.argmax(win, axis=3).astype(jnp.int8)
    return pooled, idx


def max_unpool(y, idx):
    n, hh, ww, c = y.shape
    sel = jax.lax.broadcasted_iota(jnp.int32, (n, hh, ww, 4, c), 3) == idx.astype(jnp.int32)[:, :, :, None, :]
    up = jnp.where(sel, y[:, :, :, None, :], 0).astype(y.dtype)
    up = up.reshape(n, hh, ww, 2, 2, c).transpose(0, 1, 3, 2, 4, 5)
    return up.reshape(n, 2 * hh, 2 * ww, c)


# ---------------------------------------------------------------------------- parameter init ----
def _init_conv(key, cin, cout, bn):
    kw, kb, kg, kbeta = jax.random.split(key, 4)
    fan_in = 9 * cin
    w = jax.random.normal(kw, (3, 3, cin, cout), jnp.float32) / jnp.sqrt(float(fan_in))
    b = 0.01 * jax.random.normal(kb, (cout,), jnp.float32)
    if bn:
        # eval-mode BatchNorm folded into (scale, shift): running_mean=0, running_var=1.
        eps = 1e-5
        gamma = jax.random.uniform(kg, (cout,), jnp.float32, 0.8, 1.2)
        beta = 0.01 * jax.random.normal(kbeta, (cout,), jnp.float32)
        run_mean = jnp.zeros((cout,), jnp.float32)
        run_var = jnp.ones((cout,), jnp.float32)
        s = gamma * jax.lax.rsqrt(run_var + eps)
        scale, shift = s, (b - run_mean) * s + beta
    else:
        scale, shift = jnp.ones((cout,), jnp.float32), b
    w = w * scale[None, None, None, :]                 # fold BN scale into the weights
    cin_pad = max(cin, 8)
    if cin_pad != cin:
        w = jnp.pad(w, ((0, 0), (0, 0), (0, cin_pad - cin), (0, 0)))
    cout_p = 128 if cout < 32 else cout                # lane-dense stores for the nclass head
    if cout_p != cout:
        w = jnp.pad(w, ((0, 0), (0, 0), (0, 0), (0, cout_p - cout)))
        shift = jnp.pad(shift, ((0, cout_p - cout),))
    w9 = w.reshape(9, cin_pad, cout_p).astype(_COMPUTE_DTYPE)   # (ky*3+kx, ci, co)
    return {"w9": w9, "shift": shift.reshape(1, cout_p).astype(jnp.float32)}


def _make_stage(key, channel_pairs, bn_flags):
    keys = jax.random.split(key, len(channel_pairs))
    return [_init_conv(k, ci, co, bn) for k, (ci, co), bn in zip(keys, channel_pairs, bn_flags)]


def init_fusenet_params(key, nclass):
    ks = jax.random.split(key, 16)
    p = {}
    # RGB encoder (VGG16-bn blocks: conv3x3 + BN + ReLU)
    p["layer0"] = _make_stage(ks[0], [(3, 64), (64, 64)], [True, True])
    p["layer1"] = _make_stage(ks[1], [(64, 128), (128, 128)], [True, True])
    p["layer2"] = _make_stage(ks[2], [(128, 256), (256, 256), (256, 256)], [True] * 3)
    p["layer3"] = _make_stage(ks[3], [(256, 512), (512, 512), (512, 512)], [True] * 3)
    p["layer4"] = _make_stage(ks[4], [(512, 512), (512, 512), (512, 512)], [True] * 3)
    # Depth encoder (first conv takes a 1-channel depth map)
    p["dlayer0"] = _make_stage(ks[5], [(1, 64), (64, 64)], [True, True])
    p["dlayer1"] = _make_stage(ks[6], [(64, 128), (128, 128)], [True, True])
    p["dlayer2"] = _make_stage(ks[7], [(128, 256), (256, 256), (256, 256)], [True] * 3)
    p["dlayer3"] = _make_stage(ks[8], [(256, 512), (512, 512), (512, 512)], [True] * 3)
    p["dlayer4"] = _make_stage(ks[9], [(512, 512), (512, 512), (512, 512)], [True] * 3)
    # Decoders (make_layers: conv3x3 + ReLU, no BN)
    p["dec4"] = _make_stage(ks[10], [(512, 512), (512, 512), (512, 512)], [False] * 3)
    p["dec3"] = _make_stage(ks[11], [(512, 512), (512, 512), (512, 256)], [False] * 3)
    p["dec2"] = _make_stage(ks[12], [(256, 256), (256, 256), (256, 128)], [False] * 3)
    p["dec1"] = _make_stage(ks[13], [(128, 128), (128, 64)], [False] * 2)
    # dec0: conv+BN+ReLU, then conv(64 -> nclass) with no activation
    p["dec0"] = _make_stage(ks[14], [(64, 64), (64, nclass)], [True, False])
    return p


# ------------------------------------------------------------------------------ forward pass ----
def fusenet_forward(params, x, dep, nclass=NCLASS):
    # NCHW -> NHWC, bf16 activations (f32 accumulation + epilogue inside the kernels).
    x = jnp.transpose(x, (0, 2, 3, 1)).astype(_COMPUTE_DTYPE)
    dep = jnp.transpose(dep, (0, 2, 3, 1)).astype(_COMPUTE_DTYPE)

    # Depth encoder branch (drop -> eval-mode identity)
    d0 = run_stage(dep, params["dlayer0"])
    d1 = run_stage(max_pool(d0), params["dlayer1"])
    d2 = run_stage(max_pool(d1), params["dlayer2"])
    d3 = run_stage(max_pool(d2), params["dlayer3"])
    d4 = run_stage(max_pool(d3), params["dlayer4"])

    # RGB encoder with the (x + d_i)/2 depth merge fused into the last conv of each stage
    x = run_stage(x, params["layer0"], fuse_avg_with=d0); x, i0 = max_pool_with_idx(x)
    x = run_stage(x, params["layer1"], fuse_avg_with=d1); x, i1 = max_pool_with_idx(x)
    x = run_stage(x, params["layer2"], fuse_avg_with=d2); x, i2 = max_pool_with_idx(x)
    x = run_stage(x, params["layer3"], fuse_avg_with=d3); x, i3 = max_pool_with_idx(x)
    x = run_stage(x, params["layer4"], fuse_avg_with=d4); x, i4 = max_pool_with_idx(x)

    # Decoder with max-unpooling using the saved argmax codes
    y = max_unpool(x, i4); y = run_stage(y, params["dec4"])
    y = max_unpool(y, i3); y = run_stage(y, params["dec3"])
    y = max_unpool(y, i2); y = run_stage(y, params["dec2"])
    y = max_unpool(y, i1); y = run_stage(y, params["dec1"])
    y = max_unpool(y, i0)
    y = run_stage(y, params["dec0"], last_relu=False, last_out_dtype=jnp.float32)
    y = y[..., :nclass]                                  # drop the lane-padding channels

    return (jnp.transpose(y, (0, 3, 1, 2)),)             # back to NCHW


# ----------------------------------------------------------------------------- reference check ----
def _ref_conv3x3(x, p, relu=True, fuse_add=None):
    cin = x.shape[-1]
    w9 = p["w9"].astype(jnp.float32)
    cin_pad, cout_p = w9.shape[1], w9.shape[2]
    wk = w9.reshape(3, 3, cin_pad, cout_p)[:, :, :cin, :]
    xb = x.astype(_COMPUTE_DTYPE).astype(jnp.float32)
    y = jax.lax.conv_general_dilated(
        xb, wk, window_strides=(1, 1), padding="SAME",
        dimension_numbers=("NHWC", "HWIO", "NHWC"),
        precision=jax.lax.Precision.HIGHEST)
    y = y + p["shift"].reshape(1, 1, 1, cout_p)
    if relu:
        y = jnp.maximum(y, 0.0)
    if fuse_add is not None:
        y = (y + fuse_add.astype(_COMPUTE_DTYPE).astype(jnp.float32)) * 0.5
    return y


if __name__ == "__main__":
    key = jax.random.PRNGKey(0)
    kx, kd, kp, kc1, kc2, kc3, kc4 = jax.random.split(key, 7)
    params = init_fusenet_params(kp, NCLASS)

    # --- single-conv correctness checks (exercise all kernel paths) ---
    p_chk = params["layer1"][0]                        # 64 -> 128, conv + folded BN + ReLU

    def _check(xc, fuse_add=None, force=None, tag=""):
        got = conv3x3(xc, p_chk, relu=True, fuse_add=fuse_add,
                      out_dtype=jnp.float32, _force_path=force)
        ref = _ref_conv3x3(xc, p_chk, relu=True, fuse_add=fuse_add)
        err = float(jnp.max(jnp.abs(got - ref)))
        assert err < 1e-2, (tag, err)

    _check(jax.random.normal(kc1, (2, 8, 8, 64), jnp.float32), tag="image")          # 1 image/block
    _check(jax.random.normal(kc2, (2, 2, 2, 64), jnp.float32), tag="image-multi")    # 2 images/block
    _check(jax.random.normal(kc3, (1, 16, 16, 64), jnp.float32),                     # halo path
           fuse_add=jax.random.normal(kc4, (1, 16, 16, 128), jnp.float32),
           force="halo", tag="halo")

    # --- full forward ---
    n, h, w = 2, 32, 32                    # spatial must be divisible by 2**5 (5 pooling stages)
    x = jax.random.normal(kx, (n, 3, h, w), jnp.float32)
    dep = jax.random.normal(kd, (n, 1, h, w), jnp.float32)

    fwd = jax.jit(fusenet_forward)
    (out,) = fwd(params, x, dep)
    out = jax.block_until_ready(out)
    assert out.shape == (n, NCLASS, h, w), out.shape
    assert bool(jnp.all(jnp.isfinite(out)))
    print("KERNEL_OK")
</pallas_src>

<mosaic_0001>
module attributes {stable_mosaic.version = 11 : i64} {
  func.func @_conv9_kernel(%arg0: i32, %arg1: i32, %arg2: memref<64x64xbf16, #tpu.memory_space<vmem>>, %arg3: memref<9x64x128xbf16, #tpu.memory_space<vmem>>, %arg4: memref<1x128xf32, #tpu.memory_space<vmem>>, %arg5: memref<64x128xf32, #tpu.memory_space<vmem>>, %arg6: memref<88x64xbf16, #tpu.memory_space<vmem>>) attributes {dimension_semantics = [#tpu.dimension_semantics<parallel>, #tpu.dimension_semantics<parallel>], iteration_bounds = array<i64: 1, 2>, scalar_prefetch = 0 : i64, scratch_operands = 1 : i64, tpu.core_type = #tpu.core_type<tc>, window_params = [{transform_indices = @transform_0, window_bounds = array<i64: 64, 64>}, {transform_indices = @transform_1, window_bounds = array<i64: 9, 64, 128>}, {transform_indices = @transform_2, window_bounds = array<i64: 1, 128>}, {transform_indices = @transform_3, window_bounds = array<i64: 64, 128>}]} {
    %cst = arith.constant 0.000000e+00 : bf16
    %0 = vector.broadcast %cst : bf16 to vector<1x64xbf16>
    %c0 = arith.constant 0 : index
    %c0_0 = arith.constant 0 : index
    %1 = vector.load %arg6[%c0, %c0_0] : memref<88x64xbf16, #tpu.memory_space<vmem>>, vector<1x64xbf16>
    tpu.vector_store %arg6[%c0, %c0_0], %0 {strides = array<i32>} : memref<88x64xbf16, #tpu.memory_space<vmem>>, vector<1x64xbf16>,
    %cst_1 = arith.constant 0.000000e+00 : bf16
    %2 = vector.broadcast %cst_1 : bf16 to vector<8x64xbf16>
    %c1 = arith.constant 1 : index
    %c0_2 = arith.constant 0 : index
    %3 = vector.load %arg6[%c1, %c0_2] : memref<88x64xbf16, #tpu.memory_space<vmem>>, vector<8x64xbf16>
    tpu.vector_store %arg6[%c1, %c0_2], %2 {strides = array<i32>} : memref<88x64xbf16, #tpu.memory_space<vmem>>, vector<8x64xbf16>,
    %c73 = arith.constant 73 : index
    %c0_3 = arith.constant 0 : index
    %4 = vector.load %arg6[%c73, %c0_3] : memref<88x64xbf16, #tpu.memory_space<vmem>>, vector<8x64xbf16>
    tpu.vector_store %arg6[%c73, %c0_3], %2 {strides = array<i32>} : memref<88x64xbf16, #tpu.memory_space<vmem>>, vector<8x64xbf16>,
    %c0_4 = arith.constant 0 : index
    %c0_5 = arith.constant 0 : index
    %5 = vector.load %arg2[%c0_4, %c0_5] : memref<64x64xbf16, #tpu.memory_space<vmem>>, vector<64x64xbf16>
    %c9 = arith.constant 9 : index
    %c0_6 = arith.constant 0 : index
    %6 = vector.load %arg6[%c9, %c0_6] : memref<88x64xbf16, #tpu.memory_space<vmem>>, vector<64x64xbf16>
    tpu.vector_store %arg6[%c9, %c0_6], %5 {strides = array<i32>} : memref<88x64xbf16, #tpu.memory_space<vmem>>, vector<64x64xbf16>,
    %cst_7 = arith.constant 0.000000e+00 : bf16
    %7 = vector.broadcast %cst_7 : bf16 to vector<7x64xbf16>
    %c81 = arith.constant 81 : index
    %c0_8 = arith.constant 0 : index
    %8 = vector.load %arg6[%c81, %c0_8] : memref<88x64xbf16, #tpu.memory_space<vmem>>, vector<7x64xbf16>
    tpu.vector_store %arg6[%c81, %c0_8], %7 {strides = array<i32>} : memref<88x64xbf16, #tpu.memory_space<vmem>>, vector<7x64xbf16>,
    %9 = tpu.iota {dimensions = array<i32: 0>} : vector<64x1xi32>
    %c8_i32 = arith.constant 8 : i32
    %c0_i32 = arith.constant 0 : i32
    %10 = arith.cmpi eq, %c8_i32, %c0_i32 : i32
    %c1_i32 = arith.constant 1 : i32
    %11 = arith.select %10, %c1_i32, %c8_i32 : i32
    %12 = vector.broadcast %11 : i32 to vector<64x1xi32>
    %13 = arith.remsi %9, %12 : vector<64x1xi32>
    %c0_i32_9 = arith.constant 0 : i32
    %14 = vector.broadcast %c0_i32_9 : i32 to vector<64x1xi32>
    %15 = arith.cmpi ne, %13, %14 : vector<64x1xi32>
    %c0_i32_10 = arith.constant 0 : i32
    %16 = vector.broadcast %c0_i32_10 : i32 to vector<64x1xi32>
    %17 = arith.cmpi slt, %13, %16 : vector<64x1xi32>
    %c0_i32_11 = arith.constant 0 : i32
    %18 = arith.cmpi slt, %11, %c0_i32_11 : i32
    %19 = vector.broadcast %18 : i1 to vector<64x1xi1>
    %20 = vector.broadcast %19 : vector<64x1xi1> to vector<64x1xi1>
    %21 = arith.xori %17, %20 : vector<64x1xi1>
    %22 = arith.andi %21, %15 : vector<64x1xi1>
    %23 = vector.broadcast %11 : i32 to vector<64x1xi32>
    %24 = arith.addi %13, %23 : vector<64x1xi32>
    %25 = arith.select %22, %24, %13 : vector<64x1xi1>, vector<64x1xi32>
    %c0_12 = arith.constant 0 : index
    %c0_13 = arith.constant 0 : index
    %26 = vector.load %arg6[%c0_12, %c0_13] : memref<88x64xbf16, #tpu.memory_space<vmem>>, vector<64x64xbf16>
    %c0_14 = arith.constant 0 : index
    %c0_15 = arith.constant 0 : index
    %c0_16 = arith.constant 0 : index
    %27 = vector.load %arg3[%c0_14, %c0_15, %c0_16] : memref<9x64x128xbf16, #tpu.memory_space<vmem>>, vector<1x64x128xbf16>
    %28 = vector.shape_cast %27 : vector<1x64x128xbf16> to vector<64x128xbf16>
    %cst_17 = arith.constant dense<0.000000e+00> : vector<64x128xf32>
    %29 = tpu.matmul %26, %28, %cst_17 {dimension_numbers = #tpu.dot_dimension_numbers<[1], [0], [0], [1], [0, 0, 1, 1], [], []>} : vector<64x64xbf16>, vector<64x128xbf16>, vector<64x128xf32> -> vector<64x128xf32>
    %c8 = arith.constant 8 : index
    %c0_18 = arith.constant 0 : index
    %30 = vector.load %arg6[%c8, %c0_18] : memref<88x64xbf16, #tpu.memory_space<vmem>>, vector<64x64xbf16>
    %c3 = arith.constant 3 : index
    %c0_19 = arith.constant 0 : index
    %c0_20 = arith.constant 0 : index
    %31 = vector.load %arg3[%c3, %c0_19, %c0_20] : memref<9x64x128xbf16, #tpu.memory_space<vmem>>, vector<1x64x128xbf16>
    %32 = vector.shape_cast %31 : vector<1x64x128xbf16> to vector<64x128xbf16>
    %cst_21 = arith.constant dense<0.000000e+00> : vector<64x128xf32>
    %33 = tpu.matmul %30, %32, %cst_21 {dimension_numbers = #tpu.dot_dimension_numbers<[1], [0], [0], [1], [0, 0, 1, 1], [], []>} : vector<64x64xbf16>, vector<64x128xbf16>, vector<64x128xf32> -> vector<64x128xf32>
    %34 = arith.addf %29, %33 : vector<64x128xf32>
    %c16 = arith.constant 16 : index
    %c0_22 = arith.constant 0 : index
    %35 = vector.load %arg6[%c16, %c0_22] : memref<88x64xbf16, #tpu.memory_space<vmem>>, vector<64x64xbf16>
    %c6 = arith.constant 6 : index
    %c0_23 = arith.constant 0 : index
    %c0_24 = arith.constant 0 : index
    %36 = vector.load %arg3[%c6, %c0_23, %c0_24] : memref<9x64x128xbf16, #tpu.memory_space<vmem>>, vector<1x64x128xbf16>
    %37 = vector.shape_cast %36 : vector<1x64x128xbf16> to vector<64x128xbf16>
    %cst_25 = arith.constant dense<0.000000e+00> : vector<64x128xf32>
    %38 = tpu.matmul %35, %37, %cst_25 {dimension_numbers = #tpu.dot_dimension_numbers<[1], [0], [0], [1], [0, 0, 1, 1], [], []>} : vector<64x64xbf16>, vector<64x128xbf16>, vector<64x128xf32> -> vector<64x128xf32>
    %39 = arith.addf %34, %38 : vector<64x128xf32>
    %c1_26 = arith.constant 1 : index
    %c0_27 = arith.constant 0 : index
    %40 = vector.load %arg6[%c1_26, %c0_27] : memref<88x64xbf16, #tpu.memory_space<vmem>>, vector<64x64xbf16>
    %c1_28 = arith.constant 1 : index
    %c0_29 = arith.constant 0 : index
    %c0_30 = arith.constant 0 : index
    %41 = vector.load %arg3[%c1_28, %c0_29, %c0_30] : memref<9x64x128xbf16, #tpu.memory_space<vmem>>, vector<1x64x128xbf16>
    %42 = vector.shape_cast %41 : vector<1x64x128xbf16> to vector<64x128xbf16>
    %cst_31 = arith.constant dense<0.000000e+00> : vector<64x128xf32>
    %43 = tpu.matmul %40, %42, %cst_31 {dimension_numbers = #tpu.dot_dimension_numbers<[1], [0], [0], [1], [0, 0, 1, 1], [], []>} : vector<64x64xbf16>, vector<64x128xbf16>, vector<64x128xf32> -> vector<64x128xf32>
    %c9_32 = arith.constant 9 : index
    %c0_33 = arith.constant 0 : index
    %44 = vector.load %arg6[%c9_32, %c0_33] : memref<88x64xbf16, #tpu.memory_space<vmem>>, vector<64x64xbf16>
    %c4 = arith.constant 4 : index
    %c0_34 = arith.constant 0 : index
    %c0_35 = arith.constant 0 : index
    %45 = vector.load %arg3[%c4, %c0_34, %c0_35] : memref<9x64x128xbf16, #tpu.memory_space<vmem>>, vector<1x64x128xbf16>
    %46 = vector.shape_cast %45 : vector<1x64x128xbf16> to vector<64x128xbf16>
    %cst_36 = arith.constant dense<0.000000e+00> : vector<64x128xf32>
    %47 = tpu.matmul %44, %46, %cst_36 {dimension_numbers = #tpu.dot_dimension_numbers<[1], [0], [0], [1], [0, 0, 1, 1], [], []>} : vector<64x64xbf16>, vector<64x128xbf16>, vector<64x128xf32> -> vector<64x128xf32>
    %48 = arith.addf %43, %47 : vector<64x128xf32>
    %c17 = arith.constant 17 : index
    %c0_37 = arith.constant 0 : index
    %49 = vector.load %arg6[%c17, %c0_37] : memref<88x64xbf16, #tpu.memory_space<vmem>>, vector<64x64xbf16>
    %c7 = arith.constant 7 : index
    %c0_38 = arith.constant 0 : index
    %c0_39 = arith.constant 0 : index
    %50 = vector.load %arg3[%c7, %c0_38, %c0_39] : memref<9x64x128xbf16, #tpu.memory_space<vmem>>, vector<1x64x128xbf16>
    %51 = vector.shape_cast %50 : vector<1x64x128xbf16> to vector<64x128xbf16>
    %cst_40 = arith.constant dense<0.000000e+00> : vector<64x128xf32>
    %52 = tpu.matmul %49, %51, %cst_40 {dimension_numbers = #tpu.dot_dimension_numbers<[1], [0], [0], [1], [0, 0, 1, 1], [], []>} : vector<64x64xbf16>, vector<64x128xbf16>, vector<64x128xf32> -> vector<64x128xf32>
    %53 = arith.addf %48, %52 : vector<64x128xf32>
    %c2 = arith.constant 2 : index
    %c0_41 = arith.constant 0 : index
    %54 = vector.load %arg6[%c2, %c0_41] : memref<88x64xbf16, #tpu.memory_space<vmem>>, vector<64x64xbf16>
    %c2_42 = arith.constant 2 : index
    %c0_43 = arith.constant 0 : index
    %c0_44 = arith.constant 0 : index
    %55 = vector.load %arg3[%c2_42, %c0_43, %c0_44] : memref<9x64x128xbf16, #tpu.memory_space<vmem>>, vector<1x64x128xbf16>
    %56 = vector.shape_cast %55 : vector<1x64x128xbf16> to vector<64x128xbf16>
    %cst_45 = arith.constant dense<0.000000e+00> : vector<64x128xf32>
    %57 = tpu.matmul %54, %56, %cst_45 {dimension_numbers = #tpu.dot_dimension_numbers<[1], [0], [0], [1], [0, 0, 1, 1], [], []>} : vector<64x64xbf16>, vector<64x128xbf16>, vector<64x128xf32> -> vector<64x128xf32>
    %c10 = arith.constant 10 : index
    %c0_46 = arith.constant 0 : index
    %58 = vector.load %arg6[%c10, %c0_46] : memref<88x64xbf16, #tpu.memory_space<vmem>>, vector<64x64xbf16>
    %c5 = arith.constant 5 : index
    %c0_47 = arith.constant 0 : index
    %c0_48 = arith.constant 0 : index
    %59 = vector.load %arg3[%c5, %c0_47, %c0_48] : memref<9x64x128xbf16, #tpu.memory_space<vmem>>, vector<1x64x128xbf16>
    %60 = vector.shape_cast %59 : vector<1x64x128xbf16> to vector<64x128xbf16>
    %cst_49 = arith.constant dense<0.000000e+00> : vector<64x128xf32>
    %61 = tpu.matmul %58, %60, %cst_49 {dimension_numbers = #tpu.dot_dimension_numbers<[1], [0], [0], [1], [0, 0, 1, 1], [], []>} : vector<64x64xbf16>, vector<64x128xbf16>, vector<64x128xf32> -> vector<64x128xf32>
    %62 = arith.addf %57, %61 : vector<64x128xf32>
    %c18 = arith.constant 18 : index
    %c0_50 = arith.constant 0 : index
    %63 = vector.load %arg6[%c18, %c0_50] : memref<88x64xbf16, #tpu.memory_space<vmem>>, vector<64x64xbf16>
    %c8_51 = arith.constant 8 : index
    %c0_52 = arith.constant 0 : index
    %c0_53 = arith.constant 0 : index
    %64 = vector.load %arg3[%c8_51, %c0_52, %c0_53] : memref<9x64x128xbf16, #tpu.memory_space<vmem>>, vector<1x64x128xbf16>
    %65 = vector.shape_cast %64 : vector<1x64x128xbf16> to vector<64x128xbf16>
    %cst_54 = arith.constant dense<0.000000e+00> : vector<64x128xf32>
    %66 = tpu.matmul %63, %65, %cst_54 {dimension_numbers = #tpu.dot_dimension_numbers<[1], [0], [0], [1], [0, 0, 1, 1], [], []>} : vector<64x64xbf16>, vector<64x128xbf16>, vector<64x128xf32> -> vector<64x128xf32>
    %67 = arith.addf %62, %66 : vector<64x128xf32>
    %c0_i32_55 = arith.constant 0 : i32
    %68 = vector.broadcast %c0_i32_55 : i32 to vector<64x1xi32>
    %69 = arith.cmpi eq, %25, %68 : vector<64x1xi32>
    %cst_56 = arith.constant 0.000000e+00 : f32
    %70 = vector.shape_cast %69 : vector<64x1xi1> to vector<64x1xi1>
    %71 = vector.broadcast %70 : vector<64x1xi1> to vector<64x128xi1>
    %72 = vector.broadcast %cst_56 : f32 to vector<64x128xf32>
    %73 = arith.select %71, %72, %39 : vector<64x128xi1>, vector<64x128xf32>
    %74 = arith.addf %53, %73 : vector<64x128xf32>
    %c7_i32 = arith.constant 7 : i32
    %75 = vector.broadcast %c7_i32 : i32 to vector<64x1xi32>
    %76 = arith.cmpi eq, %25, %75 : vector<64x1xi32>
    %cst_57 = arith.constant 0.000000e+00 : f32
    %77 = vector.shape_cast %76 : vector<64x1xi1> to vector<64x1xi1>
    %78 = vector.broadcast %77 : vector<64x1xi1> to vector<64x128xi1>
    %79 = vector.broadcast %cst_57 : f32 to vector<64x128xf32>
    %80 = arith.select %78, %79, %67 : vector<64x128xi1>, vector<64x128xf32>
    %81 = arith.addf %74, %80 : vector<64x128xf32>
    %c0_58 = arith.constant 0 : index
    %c0_59 = arith.constant 0 : index
    %82 = vector.load %arg4[%c0_58, %c0_59] : memref<1x128xf32, #tpu.memory_space<vmem>>, vector<1x128xf32>
    %83 = vector.broadcast %82 : vector<1x128xf32> to vector<64x128xf32>
    %84 = arith.addf %81, %83 : vector<64x128xf32>
    %cst_60 = arith.constant 0.000000e+00 : f32
    %85 = vector.broadcast %cst_60 : f32 to vector<64x128xf32>
    %86 = arith.maximumf %84, %85 : vector<64x128xf32>
    %c0_61 = arith.constant 0 : index
    %c0_62 = arith.constant 0 : index
    %87 = vector.load %arg5[%c0_61, %c0_62] : memref<64x128xf32, #tpu.memory_space<vmem>>, vector<64x128xf32>
    tpu.vector_store %arg5[%c0_61, %c0_62], %86 {strides = array<i32>} : memref<64x128xf32, #tpu.memory_space<vmem>>, vector<64x128xf32>,
    return
  }
  func.func @transform_0(%arg0: i32, %arg1: i32) -> (i32, i32) {
    %c0_i32 = arith.constant 0 : i32
    %c0_i32_0 = arith.constant 0 : i32
    return %arg1, %c0_i32 : i32, i32
  }
  func.func @transform_1(%arg0: i32, %arg1: i32) -> (i32, i32, i32) {
    %c0_i32 = arith.constant 0 : i32
    %c0_i32_0 = arith.constant 0 : i32
    %c0_i32_1 = arith.constant 0 : i32
    return %c0_i32, %c0_i32_0, %arg0 : i32, i32, i32
  }
  func.func @transform_2(%arg0: i32, %arg1: i32) -> (i32, i32) {
    %c0_i32 = arith.constant 0 : i32
    %c0_i32_0 = arith.constant 0 : i32
    return %c0_i32, %arg0 : i32, i32
  }
  func.func @transform_3(%arg0: i32, %arg1: i32) -> (i32, i32) {
    %c0_i32 = arith.constant 0 : i32
    return %arg1, %arg0 : i32, i32
  }
}

</mosaic_0001>

<bundles_post_ra>
// kernel: tpu_custom_call.1
= control target key start
LH: loop header
LB: loop body
LE: loop exit
PB: predicated region body
PF: predicated region fallthrough
CT: control target
= control target key end

     0   :  { %8 = vsyncpa [#allocation4], 0  ;;  %s3051_s0 = inlined_call_operand.vmem [shape: bf16[128,64], index: 0, kind: input, shape index: {}]   ;;  %s3052_s1 = inlined_call_operand.hbm [shape: bf16[9,64,128], index: 1, kind: input, shape index: {}]   ;;  %s3053_s2 = inlined_call_operand.vmem [shape: f32[1,128], index: 2, kind: input, shape index: {}]   ;;  %s3054_s3 = inlined_call_operand.hbm [shape: f32[128,128], index: 3, kind: output, shape index: {}]  }
   0x1   :  { %9 = vsyncpa [#allocation5], 0 }
   0x2   :  { %11 = vsyncpa [#allocation5 + $0x1], 0  ;;  %s2610_s12 = smov 0   ;;  %s2612_s13 = smov 0  }
   0x3   :  { %s2614_s14 = smov 0   ;;  %s2616_s15 = smov 0  }
   0x4   :  { %s2618_s16 = smov 0   ;;  %s2620_s17 = smov 0  }
   0x5 LB: > { %s1954_s18 = sadd.s32 4294967295, %s2582_s17   ;;  %s1955_s19 = sadd.s32 4294967294, %s2582_s17   ;;  %s2582_s17 = sphi %s2620_s17, %s17_s17   ;;  %s2578_s16 = sphi %s2618_s16, %s3086_s16   ;;  %s2574_s15 = sphi %s2616_s15, %s3085_s15   ;;  %s2570_s14 = sphi %s2614_s14, %s3084_s14   ;;  %s2566_s13 = sphi %s2612_s13, %s3083_s13   ;;  %s2562_s12 = sphi %s2610_s12, %s3082_s12  }
   0x6   : > { %s26_s20 = sadd.s32 1, %s2578_s16  ;;  %s116_s21 = sadd.s32 1, %s2570_s14 }
   0x7   : > { %p27_p0 = scmp.ge.s32.totalorder %s26_s20, 2  ;;  %p126_p1 = scmp.ne.s32.totalorder %s2570_s14, %s2566_s13 }
   0x8   : > { %p127_p2 = scmp.eq.s32.totalorder %s1954_s18, 1  ;;  %p132_p3 = scmp.ne.s32.totalorder %s2566_s13, %s2562_s12 }
   0x9   : > { %s3088_s20 = smov (%p27_p0, %s26_s20), 0  ;;  %p133_p5 = scmp.eq.s32.totalorder %s1955_s19, 1 }
   0xa   : > { %p2650_p4 = por %p127_p2, %p126_p1  ;;  %s111_s23 = ssub.s32 %s2578_s16, %s3088_s20 }
   0xb   : > { %p1956_p6 = scmp.ge.s32.totalorder %s2582_s17, 1  ;;  %p114_p7 = scmp.eq.s32.totalorder %s111_s23, 0 }
   0xc   : > { %s3059_s22 = scalar_select %p2650_p4, 1, 0 }
   0xd   : > { %p2657_p8 = por %p133_p5, %p132_p3  ;;  %p140_p9 = scmp.lt.s32.totalorder %s2582_s17, 3 }
   0xe   : > { %s2663_s25 = scalar_select %p114_p7, %s2570_s14, %s116_s21  }
   0xf   : > { %s3060_s24 = scalar_select %p2657_p8, 1, 0 }
  0x10   : > { %p2665_p10 = pnand %p1956_p6, %p140_p9  ;;  %p2669_p11 = scmp.eq.s32.totalorder %s1954_s18, 0 }
  0x11   : > { %s2584_s28 = smov [#allocation3]   ;;  %s2472_s6 = scalar_lea.hbm %s3052_s1, 4608 }
  0x12   : > { %s3061_s26 = scalar_select %p2665_p10, 1, 0 }
  0x13   : > { %s3062_s27 = scalar_select %p2669_p11, 1, 0 }
  0x14   : > { %p2349_p12 = pneg %p2665_p10  ;;  %s154_s29 = sshll.u32 %s2584_s28, 4  ;;  %s155_s29 = int_to_ptr.vmem [resolvable:$true] %s154_s29 }
  0x15   : > { %p2473_p0 = scmp.ne.s32.totalorder %s3052_s1, %s2472_s6  ;;  %p2479_p5 = scmp.lt.u32.totalorder %s2472_s6, %s3052_s1 }
  0x16   : > { %p2677_p13 = pnand %p2669_p11, %p2349_p12 }
  0x18   : > { %p2474_p1 = pneg %p2677_p13 }
  0x1a   : > { %p2475_p2 = pnand %p2474_p1, %p2473_p0 }
  0x1c   : > { %p2476_p3 = pneg %p2475_p2 }
  0x1e   : > { %p2481_p6 = pnand %p2479_p5, %p2476_p3 }
  0x20   : > { %2484 = shalt.err (!%p2481_p6)
}
  0x21   : > { %s2485_s11 = scalar_lea.vmem %s155_s29, 4608  ;;  %p2493_p8 = scmp.lt.s32.totalorder %s155_s29, %s155_s29 }
  0x22   : > { %p2486_p7 = scmp.ne.s32.totalorder %s155_s29, %s2485_s11  ;;  %p2494_p4 = scmp.lt.s32.totalorder %s2485_s11, %s2485_s11 }
  0x24   : > { %p2488_p9 = pnand %p2486_p7, %p2474_p1  ;;  %p2495_p11 = por %p2494_p4, %p2493_p8 }
  0x26   : > { %p2489_p12 = pneg %p2488_p9 }
  0x28   : > { %p2496_p10 = pnand %p2495_p11, %p2489_p12 }
  0x2a   : > { %2499 = shalt.err (!%p2496_p10)
}
  0x2b   : > { %s2585_s18 = smov 64   ;;  %s2586_s19 = smov 4  }
  0x2c   : > { %2352 = dma.hbm_to_vmem [thread:$0]  (!%p2677_p13), %s3052_s1, 4608, %s155_s29, [#allocation4], %s2585_s18, %s2585_s18, %s2586_s19  }
  0x2d   : > { %p3064_p0 = scmp.ne.s32.totalorder %s3061_s26, 0 }
  0x2e   : > { %p3065_p2 = scmp.ne.s32.totalorder (!%p3064_p0), %s3062_s27, 0 }
  0x2f   : > { %185 = sbr.rel (%p3064_p0) target bundleno = 389 (0x185), region = 32 }
  0x36   : > { %2553 = dma.done.wait (%p3065_p2), [#allocation4], 4608  }
  0x37   : > { %2555 = vsyncadd (%p3065_p2), [#allocation4], 4294962688  ;;  %s1963_s28 = sshll.u32 %s2574_s15, 3  ;;  %vm223_vm0 = vcmask 516096   ;;  %vm224_vm1 = vsmask.f32 256 }
  0x38   : > { %p213_p4 = scmp.lt.s32.totalorder %s1963_s28, 15  ;;  %vm2705_vm2 = vmand %vm223_vm0, %vm224_vm1  ;;  %v2413_v1 = vld [vmem:[#allocation3 + $0x60] sm:$0xff]   ;;  %v2415_v3 = vld [vmem:[#allocation3 + $0x68] sm:$0xff]   ;;  %vm252_vm3 = vsmask.f32 4368  ;;  %vm229_vm5 = vcmask 519168  }
  0x39   : > { %v2414_v2 = vld [vmem:[#allocation3] sm:$0xff]   ;;  %2143 = vmatprep.subr.bf16.mxu1 %v2413_v1  ;;  %v2416_v4 = vld [vmem:[#allocation3 + $0x8] sm:$0xff]   ;;  %v2417_v5 = vld [vmem:[#allocation3 + $0x70] sm:$0xff]   ;;  %vm230_vm4 = vsmask.f32 7938  ;;  %vm526_vm8 = vcmask 523264  }
  0x3a   : > { %s3090_s28 = smov (!%p213_p4, %s1963_s28), 15  ;;  %2144 = vmatpush3.bf16.msra.mxu1 %v2413_v1  ;;  %2159 = vmatprep.subr.bf16.mxu0 %v2414_v2  ;;  %v2418_v6 = vld [vmem:[#allocation3 + $0x10] sm:$0xff]   ;;  %v2419_v7 = vld [vmem:[#allocation3 + $0x78] sm:$0xff]   ;;  %v2722_v27 = vld [vmem:[#allocation3 + $0x80] sm:$0xff]   ;;  %vm888_vm9 = vsmask.f32 7424 }
  0x3b   : > { %s1964_s26 = sshll.u32 %s3090_s28, 2  ;;  %2160 = vmatpush3.bf16.msra.mxu0 %v2414_v2  ;;  %2145 = vmatprep.subr.bf16.mxu1 %v2415_v3  ;;  %v2420_v8 = vld [vmem:[#allocation3 + $0x18] sm:$0xff]   ;;  %v226_v9 = vld [vmem:[#allocation2] sm:$0x1]  ;;  %v2724_v28 = vld [vmem:[#allocation3 + $0xc0] sm:$0xff]   ;;  %vm1375_vm10 = vcmask 1046528  }
  0x3c   : > { %2161 = vmatprep.subr.bf16.mxu0 %v2416_v4  ;;  %s2712_s30 = scalar_lea.vmem %s3051_s0, %s1964_s26  ;;  %v235_v10 = vld [vmem:[#allocation2 + $0x4] sm:$0x1]  ;;  %v227_v12 = vsel %vm2705_vm2, 0, %v226_v9  ;;  %vm2728_vm6 = vmor %vm224_vm1, %vm252_vm3  ;;  %s209_s4 = sand.u32 1, %s2566_s13  }
  0x3d   : > { %v244_v11 = vld [vmem:[%s2712_s30] sm:$0xf]  ;;  %v236_v13 = vsel %vm2705_vm2, 0, %v235_v10  ;;  %v245_v14 = vld [vmem:[%s2712_s30 + $0x4] sm:$0xf]  ;;  %vm2734_vm7 = vmand %vm229_vm5, %vm230_vm4  ;;  %s1962_s7 = sshll.u32 %s209_s4, 6 }
  0x3e   : > { %2146 = vmatpush3.bf16.msra.mxu1 %v2415_v3  ;;  %v246_v15 = vld [vmem:[%s2712_s30 + $0x8] sm:$0xf]  ;;  %228 = vst [vmem:[#allocation2] sm:$0x1] %v227_v12  ;;  %237 = vst [vmem:[#allocation2 + $0x4] sm:$0x1] %v236_v13 }
  0x3f   : > { %2162 = vmatpush3.bf16.msra.mxu0 %v2416_v4  ;;  %2147 = vmatprep.subr.bf16.mxu1 %v2417_v5  ;;  %v247_v16 = vld [vmem:[%s2712_s30 + $0xc] sm:$0xf]  ;;  %v255_v17 = vshrl.u32 %v244_v11, 16  ;;  %v258_v18 = vshll.u32 %v244_v11, 16  ;;  %v263_v19 = vshrl.u32 %v245_v14, 16  ;;  %v266_v20 = vshll.u32 %v245_v14, 16 }
  0x40   : > { %2163 = vmatprep.subr.bf16.mxu0 %v2418_v6  ;;  %v272_v21 = vshrl.u32 %v246_v15, 16  ;;  %v275_v22 = vshll.u32 %v246_v15, 16  ;;  %v281_v23 = vshrl.u32 %v247_v16, 16  ;;  %v284_v24 = vshll.u32 %v247_v16, 16  ;;  %v248_v41 = vld [vmem:[%s2712_s30 + $0x10] sm:$0xf] }
  0x41   : > { %v257_v25 = vrot.slane %v255_v17, 7  ;;  %v265_v26 = vrot.slane %v263_v19, 7  ;;  %v249_v42 = vld [vmem:[%s2712_s30 + $0x14] sm:$0xf]  ;;  %v290_v47 = vshrl.u32 %v248_v41, 16  ;;  %v293_v48 = vshll.u32 %v248_v41, 16 }
  0x42   : > { %2148 = vmatpush3.bf16.msra.mxu1 %v2417_v5  ;;  %v274_v30 = vrot.slane %v272_v21, 7  ;;  %v283_v31 = vrot.slane %v281_v23, 7  ;;  %v299_v51 = vshrl.u32 %v249_v42, 16  ;;  %v302_v52 = vshll.u32 %v249_v42, 16  ;;  %v250_v55 = vld [vmem:[%s2712_s30 + $0x18] sm:$0xf] }
  0x43   : > { %2164 = vmatpush3.bf16.msra.mxu0 %v2418_v6  ;;  %2149 = vmatprep.subr.bf16.mxu1 %v2419_v7  ;;  %v260_v32 = vor.u32 %v258_v18, %v257_v25  ;;  %v261_v33 = vrot.slane %v257_v25, 4  ;;  %v268_v34 = vor.u32 %v266_v20, %v265_v26  ;;  %v270_v35 = vrot.slane %v265_v26, 4  ;;  %v251_v57 = vld [vmem:[%s2712_s30 + $0x1c] sm:$0xf]  ;;  %v2428_v18 = vld [vmem:[#allocation3 + $0x88] sm:$0xff]   ;;  %s2978_s8 = scalar_lea.vmem [#allocation6], %s1962_s7 }
  0x44   : > { %2165 = vmatprep.subr.bf16.mxu0 %v2420_v8  ;;  %v277_v37 = vor.u32 %v275_v22, %v274_v30  ;;  %v279_v38 = vrot.slane %v274_v30, 4  ;;  %v286_v39 = vor.u32 %v284_v24, %v283_v31  ;;  %v288_v53 = vrot.slane %v283_v31, 4  ;;  %v2429_v26 = vld [vmem:[#allocation3 + $0xc8] sm:$0xff]   ;;  %s2070_s9 = sshll.u32 %s2574_s15, 10  ;;  %s1856_s10 = sshll.u32 %s2978_s8, 4  ;;  %s2998_s10 = int_to_ptr.vmem [resolvable:$true] %s1856_s10 }
  0x45   : > { %v269_v40 = vsel %vm2728_vm6, %v261_v33, %v268_v34  ;;  %v232_v43 = vld [vmem:[#allocation2] sm:$0xf]  ;;  %v334_v46 = vld [vmem:[#allocation2 + $0x4] sm:$0xf]  ;;  %v292_v54 = vrot.slane %v290_v47, 7  ;;  %v301_v56 = vrot.slane %v299_v51, 7  ;;  %s2996_s19 = scalar_lea.hbm %s3054_s3, %s2070_s9 }
  0x46   : > { %2150 = vmatpush3.bf16.msra.mxu1 %v2419_v7  ;;  %v278_v44 = vsel %vm2728_vm6, %v270_v35, %v277_v37  ;;  %v287_v45 = vsel %vm2728_vm6, %v279_v38, %v286_v39  ;;  %338 = vst.msk [vmem:[#allocation2 + $0x8] sm:$0xf] %vm229_vm5, %v269_v40  ;;  %v233_v49 = vsel %vm2734_vm7, 0, %v232_v43  ;;  %v335_v50 = vsel %vm2734_vm7, %v260_v32, %v334_v46  ;;  %v2431_v39 = vld [vmem:[#allocation3 + $0x90] sm:$0xff]   ;;  %s3005_s15 = scalar_lea.sflag [#allocation5], %s209_s4  ;;  %s2500_s21 = scalar_lea.vmem %s2998_s10, 1024 }
  0x47   : > { %2166 = vmatpush3.bf16.msra.mxu0 %v2420_v8  ;;  %2191 = vmatprep.subr.bf16.mxu1 %v2722_v27  ;;  %339 = vst.msk [vmem:[#allocation2 + $0xc] sm:$0xf] %vm229_vm5, %v278_v44  ;;  %340 = vst.msk [vmem:[#allocation2 + $0x10] sm:$0xf] %vm229_vm5, %v287_v45  ;;  %v308_v58 = vshrl.u32 %v250_v55, 16  ;;  %v311_v59 = vshll.u32 %v250_v55, 16  ;;  %v295_v60 = vor.u32 %v293_v48, %v292_v54  ;;  %p2501_p8 = scmp.ne.s32.totalorder %s2998_s10, %s2500_s21 }
  0x48   : > { %2175 = vmatprep.subr.bf16.mxu0 %v2724_v28  ;;  %234 = vst [vmem:[#allocation2] sm:$0xf] %v233_v49  ;;  %336 = vst [vmem:[#allocation2 + $0x4] sm:$0xf] %v335_v50  ;;  %v297_v61 = vrot.slane %v292_v54, 4  ;;  %v317_v62 = vshrl.u32 %v251_v57, 16  ;;  %v304_v1 = vor.u32 %v302_v52, %v301_v56 }
  0x49   : > { %v320_v63 = vshll.u32 %v251_v57, 16  ;;  %v306_v2 = vrot.slane %v301_v56, 4  ;;  %v310_v3 = vrot.slane %v308_v58, 7  ;;  %v296_v4 = vsel %vm2728_vm6, %v288_v53, %v295_v60  ;;  %v2433_v43 = vld [vmem:[#allocation3 + $0xd0] sm:$0xff]   ;;  %v2434_v45 = vld [vmem:[#allocation3 + $0x98] sm:$0xff]   ;;  %p3080_p10 = scmp.ne.s32.totalorder %s3059_s22, 0 }
  0x4a   : > { %v2759_v5 = vrot.slane %v317_v62, 7  ;;  %v305_v7 = vsel %vm2728_vm6, %v297_v61, %v304_v1  ;;  %341 = vst.msk [vmem:[#allocation2 + $0x14] sm:$0xf] %vm229_vm5, %v296_v4  ;;  %v2435_v54 = vld [vmem:[#allocation3 + $0xd8] sm:$0xff]   ;;  %s2587_s23 = smov [#allocation6]  }
  0x4b   : > { %v313_v8 = vor.u32 %v311_v59, %v310_v3  ;;  %v315_v9 = vrot.slane %v310_v3, 4  ;;  %342 = vst.msk [vmem:[#allocation2 + $0x18] sm:$0xf] %vm229_vm5, %v305_v7  ;;  %v238_v56 = vld [vmem:[#allocation2 + $0x24] sm:$0xf]  ;;  %p2502_p11 = pnand %p2501_p8, %p3080_p10  ;;  %s2504_s28 = sshll.u32 %s2587_s23, 4  ;;  %s2505_s28 = int_to_ptr.vmem [resolvable:$false] %s2504_s28 }
  0x4c   : > { %v322_v12 = vor.u32 %v320_v63, %v2759_v5  ;;  %v239_v58 = vsel %vm2734_vm7, 0, %v238_v56  ;;  %v2441_v63 = vld [vmem:[#allocation3 + $0x20] sm:$0xff]   ;;  %s2506_s26 = scalar_lea.vmem %s2505_s28, 2048  ;;  %p2507_p1 = scmp.lt.s32.totalorder %s2998_s10, %s2505_s28 }
  0x4d   : > { %v458_v6 = vld [vmem:[#allocation2 + $0x8] sm:$0xf]  ;;  %v314_v19 = vsel %vm2728_vm6, %v306_v2, %v313_v8  ;;  %240 = vst [vmem:[#allocation2 + $0x24] sm:$0xf] %v239_v58  ;;  %v2442_v2 = vld [vmem:[#allocation3 + $0xa0] sm:$0xff]   ;;  %p2503_p13 = pneg %p2502_p11  ;;  %p2508_p3 = scmp.lt.s32.totalorder %s2506_s26, %s2500_s21 }
  0x4e   : > { %v459_v10 = vld [vmem:[#allocation2 + $0xc] sm:$0xf]  ;;  %v460_v11 = vld [vmem:[#allocation2 + $0x10] sm:$0xf]  ;;  %v2766_v13 = vld [vmem:[#allocation2 + $0x8] sm:$0xf]  ;;  %v323_v22 = vsel %vm2728_vm6, %v315_v9, %v322_v12 }
  0x4f   : > { %v2768_v14 = vld [vmem:[#allocation2 + $0x4] sm:$0xf]  ;;  %v1966_v15 = vcombine.low %v459_v10, %v460_v11  ;;  %v2770_v16 = vcombine.low %v458_v6, %v459_v10  ;;  %v456_v17 = vld [vmem:[#allocation2] sm:$0xf]  ;;  %343 = vst.msk [vmem:[#allocation2 + $0x1c] sm:$0xf] %vm229_vm5, %v314_v19  ;;  %p2509_p5 = por %p2508_p3, %p2507_p1 }
  0x50   : > { %v1965_v20 = vcombine.low %v2768_v14, %v458_v6  ;;  %v1977_v21 = vcombine.low %v456_v17, %v2768_v14  ;;  %v2779_v23 = vld [vmem:[#allocation2 + $0xc] sm:$0xf]  ;;  %v2781_v24 = vld [vmem:[#allocation2 + $0x10] sm:$0xf]  ;;  %v868_v25 = vld [vmem:[#allocation2 + $0x4] sm:$0xf] }
  0x51   : > { %344 = vst.msk [vmem:[#allocation2 + $0x20] sm:$0xf] %vm229_vm5, %v323_v22  ;;  %v2786_v30 = vcombine.low %v2779_v23, %v2781_v24  ;;  %v2001_v31 = vcombine.low %v868_v25, %v2766_v13  ;;  %v461_v34 = vld [vmem:[#allocation2 + $0x14] sm:$0xf]  ;;  %v1989_v57 = vcombine.low %v2766_v13, %v2779_v23  ;;  %v857_v3 = vld [vmem:[#allocation2] sm:$0xf]  ;;  %p2510_p6 = pnand %p2509_p5, %p2503_p13 }
  0x52   : > { %2151 = vmatprep.mubr.msk.bf16.mxu1 %vm526_vm8, %v1965_v20  ;;  %2167 = vmatprep.mubr.msk.bf16.mxu0 %vm526_vm8, %v1977_v21  ;;  %v2797_v35 = vld [vmem:[#allocation2 + $0x14] sm:$0xf]  ;;  %v462_v37 = vld [vmem:[#allocation2 + $0x18] sm:$0xf]  ;;  %v2799_v38 = vcombine.low %v460_v11, %v461_v34  ;;  %v324_v9 = vrot.slane %v2759_v5, 4  ;;  %v2014_v12 = vcombine.low %v857_v3, %v2768_v14  ;;  %v2447_v20 = vld [vmem:[#allocation3 + $0x30] sm:$0xff]  }
  0x53   : > { %2152 = vmatmul.mubr.msk.bf16.vlgmr.msra.gmra.mrb[0].mxu1 %vm526_vm8, %v1966_v15  ;;  %2168 = vmatmul.mubr.msk.bf16.vlgmr.msra.gmra.mrb[0].mxu0 %vm526_vm8, %v2770_v16  ;;  %v890_v29 = vshrl.u32 %v2001_v31, 16  ;;  %v892_v32 = vshll.u32 %v2001_v31, 16  ;;  %v897_v33 = vshll.u32 %v2786_v30, 16  ;;  %v2801_v40 = vld [vmem:[#allocation2 + $0x18] sm:$0xf]  ;;  %v1967_v42 = vcombine.low %v461_v34, %v462_v37  ;;  %v2449_v22 = vld [vmem:[#allocation3 + $0xb0] sm:$0xff]  }
  0x54   : > { %2192 = vmatpush3.bf16.msra.mxu1 %v2722_v27  ;;  %2176 = vmatpush3.bf16.msra.mxu0 %v2724_v28  ;;  %v2805_v44 = vcombine.low %v2797_v35, %v2801_v40  ;;  %v901_v50 = vshrl.u32 %v2786_v30, 16  ;;  %v1990_v4 = vcombine.low %v2781_v24, %v2797_v35  ;;  %v2443_v6 = vld [vmem:[#allocation3 + $0x28] sm:$0xff]   ;;  %v1362_v15 = vld [vmem:[#allocation2 + $0x4] sm:$0xe]  ;;  %v1035_v23 = vshll.u32 %v2014_v12, 16 }
  0x55   : > { %2193 = vmatprep.subr.bf16.mxu1 %v2428_v18  ;;  %2177 = vmatprep.subr.bf16.mxu0 %v2429_v26  ;;  %v894_v41 = vrot.slane %v892_v32, 1  ;;  %v899_v27 = vrot.slane %v897_v33, 1  ;;  %v2444_v11 = vld [vmem:[#allocation3 + $0xa8] sm:$0xff]   ;;  %v2037_v21 = vcombine.low %v1362_v15, %v2766_v13  ;;  %v1039_v24 = vshll.u32 %v2770_v16, 16  ;;  %v2450_v31 = vld [vmem:[#allocation3 + $0x38] sm:$0xff]  }
  0x56   : > { %2171 = vmatprep.mubr.msk.bf16.mxu0 %vm526_vm8, %v2799_v38  ;;  %v463_v28 = vld [vmem:[#allocation2 + $0x1c] sm:$0xf]  ;;  %v905_v51 = vshll.u32 %v2805_v44, 16  ;;  %2155 = vmatprep.mubr.msk.bf16.mxu1 %vm526_vm8, %v1967_v42  ;;  %v909_v60 = vshrl.u32 %v2805_v44, 16  ;;  %v2451_v13 = vld [vmem:[#allocation3 + $0xb8] sm:$0xff]   ;;  %v1037_v32 = vrot.slane %v1035_v23, 1 }
  0x57   : > { %v895_v46 = vor.u32 %v894_v41, %v890_v29  ;;  %v2809_v47 = vld [vmem:[#allocation2 + $0x1c] sm:$0xf]  ;;  %v2811_v49 = vcombine.low %v462_v37, %v463_v28  ;;  %v903_v62 = vor.u32 %v901_v50, %v899_v27  ;;  %v1376_v25 = vrot.slane %v2037_v21, 1  ;;  %v2852_v37 = vld [vmem:[#allocation3 + $0xe0] sm:$0xff]   ;;  %v1166_v42 = vld [vmem:[#allocation2 + $0x8] sm:$0xf] }
  0x58   : > { %2194 = vmatpush3.bf16.msra.mxu1 %v2428_v18  ;;  %2178 = vmatpush3.bf16.msra.mxu0 %v2429_v26  ;;  %v472_v48 = vld [vmem:[#allocation2 + $0x20] sm:$0xf]  ;;  %v907_v1 = vrot.slane %v905_v51, 1  ;;  %v1991_v17 = vcombine.low %v2801_v40, %v2809_v47  ;;  %v345_v18 = vld [vmem:[#allocation2 + $0x24] sm:$0x1]  ;;  %v1377_v26 = vrot.slane %v2786_v30, 1 }
  0x59   : > { %v2815_v52 = vld [vmem:[#allocation2 + $0x20] sm:$0xf]  ;;  %2195 = vmatprep.subr.bf16.mxu1 %v2431_v39  ;;  %v1968_v53 = vcombine.low %v463_v28, %v472_v48  ;;  %2179 = vmatprep.subr.bf16.mxu0 %v2433_v43  ;;  %v900_v59 = vsel %vm888_vm9, %v895_v46, %v899_v27  ;;  %v346_v19 = vsel %vm2705_vm2, %v324_v9, %v345_v18  ;;  %v1033_v29 = vshrl.u32 %v2014_v12, 16  ;;  %v2454_v41 = vld [vmem:[#allocation3 + $0x40] sm:$0xff]   ;;  %v241_v58 = vld [vmem:[#allocation2 + $0x28] sm:$0x1] }
  0x5a   : > { %v2820_v55 = vcombine.low %v2809_v47, %v2815_v52  ;;  %v911_v7 = vor.u32 %v909_v60, %v907_v1  ;;  %v908_v10 = vsel %vm888_vm9, %v903_v62, %v907_v1  ;;  %347 = vst [vmem:[#allocation2 + $0x24] sm:$0x1] %v346_v19  ;;  %v1041_v35 = vrot.slane %v1039_v24, 1  ;;  %v2858_v27 = vld [vmem:[#allocation2 + $0xc] sm:$0xf]  ;;  %v2456_v62 = vld [vmem:[#allocation3 + $0x48] sm:$0xff]  }
  0x5b   : > { %2156 = vmatmul.mubr.msk.bf16.gmra.mrb[4].mxu1 %vm526_vm8, %v1968_v53  ;;  %2172 = vmatmul.mubr.msk.bf16.gmra.mrb[4].mxu0 %vm526_vm8, %v2811_v49  ;;  %v1378_v30 = vsel %vm1375_vm10, %v1376_v25, %v1377_v26  ;;  %v1043_v28 = vshrl.u32 %v2770_v16, 16  ;;  %v1046_v47 = vshll.u32 %v2799_v38, 16  ;;  %v1379_v48 = vrot.slane %v2805_v44, 1  ;;  %v2879_v1 = vld [vmem:[#allocation2 + $0x20] ss:$0 sps:$4 sm:$0x11]  }
  0x5c   : > { %v913_v61 = vshll.u32 %v2820_v55, 16  ;;  %2196 = vmatpush3.bf16.msra.mxu1 %v2431_v39  ;;  %2180 = vmatpush3.bf16.msra.mxu0 %v2433_v43  ;;  %v917_v33 = vshrl.u32 %v2820_v55, 16  ;;  %v1038_v43 = vor.u32 %v1037_v32, %v1033_v29  ;;  %v1050_v51 = vshrl.u32 %v2799_v38, 16  ;;  %v2882_v0 = vld [vmem:[#allocation2 + $0x10] sm:$0xff]   ;;  %v2461_v25 = vld [vmem:[#allocation3 + $0x58] sm:$0xff]  }
  0x5d   : > { %2197 = vmatprep.subr.bf16.mxu1 %v2434_v45  ;;  %2181 = vmatprep.subr.bf16.mxu0 %v2435_v54  ;;  %v1381_v53 = vrot.slane %v2820_v55, 1  ;;  %v2024_v56 = vcombine.low %v1166_v42, %v2858_v27  ;;  %v1045_v60 = vor.u32 %v1043_v28, %v1041_v35  ;;  %v1380_v55 = vsel %vm1375_vm10, %v1377_v26, %v1379_v48  ;;  %v2455_v12 = vld [vmem:[#allocation3 + $0xe8] sm:$0xff]  }
  0x5e   : > { %2183 = vmatprep.mubr.msk.bf16.mxu0 %vm526_vm8, %v1989_v57  ;;  %2199 = vmatprep.mubr.msk.bf16.mxu1 %vm526_vm8, %v900_v59  ;;  %v915_v8 = vrot.slane %v913_v61, 1  ;;  %v1352_v57 = vld [vmem:[#allocation2] sm:$0xe]  ;;  %v242_v59 = vsel %vm2705_vm2, 0, %v241_v58  ;;  %v1048_v61 = vrot.slane %v1046_v47, 1  ;;  %v1057_v9 = vshrl.u32 %v2811_v49, 16 }
  0x5f   : > { %243 = vst [vmem:[#allocation2 + $0x28] sm:$0x1] %v242_v59  ;;  %v1208_v18 = vshrl.u32 %v2024_v56, 16  ;;  %v1215_v19 = vshll.u32 %v2882_v0, 16  ;;  %v1219_v36 = vshrl.u32 %v2882_v0, 16 }
  0x60   : > { %2198 = vmatpush3.bf16.msra.mxu1 %v2434_v45  ;;  %2182 = vmatpush3.bf16.msra.mxu0 %v2435_v54  ;;  %v916_v5 = vsel %vm888_vm9, %v911_v7, %v915_v8  ;;  %v919_v45 = vor.u32 %v917_v33, %v915_v8  ;;  %v1042_v54 = vsel %vm888_vm9, %v1038_v43, %v1041_v35  ;;  %v1599_v43 = vld [vmem:[#allocation2 + $0x8] sm:$0xe] }
  0x61   : > { %2207 = vmatprep.subr.bf16.mxu1 %v2441_v63  ;;  %2239 = vmatprep.subr.bf16.mxu0 %v2442_v2  ;;  %v718_v34 = vld [vmem:[#allocation2 + $0x24] sm:$0xf]  ;;  %v1052_v3 = vor.u32 %v1050_v51, %v1048_v61  ;;  %v1049_v7 = vsel %vm888_vm9, %v1045_v60, %v1048_v61  ;;  %v1217_v29 = vrot.slane %v1215_v19, 1 }
  0x62   : > { %v1992_v39 = vcombine.low %v2815_v52, %v718_v34  ;;  %v2855_v40 = vld [vmem:[#allocation2 + $0x24] ss:$0 sps:$4 sm:$0x11]   ;;  %v1053_v52 = vshll.u32 %v2811_v49, 16  ;;  %v1492_v34 = vrot.slane %v2799_v38, 1 }
  0x63   : > { %2184 = vmatmul.mubr.msk.bf16.vlgmr.msra.gmra.mrb[0].mxu0 %vm526_vm8, %v1990_v4  ;;  %2200 = vmatmul.mubr.msk.bf16.vlgmr.msra.gmra.mrb[8].mxu1 %vm526_vm8, %v908_v10  ;;  %v921_v46 = vshll.u32 %v2855_v40, 16  ;;  %v1383_v8 = vrot.slane %v2855_v40, 1  ;;  %v1061_v10 = vshll.u32 %v2879_v1, 16  ;;  %v2902_v32 = vld [vmem:[#allocation2 + $0x20] sm:$0xff]   ;;  %v1221_v38 = vor.u32 %v1219_v36, %v1217_v29 }
  0x64   : > { %2208 = vmatpush3.bf16.msra.mxu1 %v2441_v63  ;;  %2240 = vmatpush3.bf16.msra.mxu0 %v2442_v2  ;;  %v1382_v63 = vsel %vm1375_vm10, %v1379_v48, %v1381_v53  ;;  %v2046_v2 = vcombine.low %v1352_v57, %v2768_v14  ;;  %v1055_v4 = vrot.slane %v1053_v52, 1  ;;  %v1231_v42 = vshll.u32 %v2902_v32, 16 }
  0x65   : > { %2209 = vmatprep.subr.bf16.mxu1 %v2443_v6  ;;  %2241 = vmatprep.subr.bf16.mxu0 %v2444_v11  ;;  %v923_v50 = vrot.slane %v921_v46, 1  ;;  %v1384_v21 = vsel %vm1375_vm10, %v1381_v53, %v1383_v8  ;;  %v1063_v24 = vrot.slane %v1061_v10, 1  ;;  %v2055_v48 = vcombine.low %v1599_v43, %v2858_v27 }
  0x66   : > { %2187 = vmatprep.mubr.msk.bf16.mxu0 %vm526_vm8, %v1991_v17  ;;  %2203 = vmatprep.mubr.msk.bf16.mxu1 %vm526_vm8, %v916_v5  ;;  %v1489_v14 = vrot.slane %v2046_v2, 1  ;;  %v1056_v15 = vsel %vm888_vm9, %v1052_v3, %v1055_v4  ;;  %v2459_v17 = vld [vmem:[#allocation3 + $0x50] sm:$0xff]   ;;  %v1233_v51 = vrot.slane %v1231_v42, 1  ;;  %v1496_v53 = vrot.slane %v2879_v1, 1 }
  0x67   : > { %v924_v44 = vsel %vm888_vm9, %v919_v45, %v923_v50  ;;  %v1612_v57 = vrot.slane %v2055_v48, 1  ;;  %v1613_v27 = vrot.slane %v2882_v0, 1  ;;  %v1617_v1 = vrot.slane %v2902_v32, 1 }
  0x68   : > { %2210 = vmatpush3.bf16.msra.mxu1 %v2443_v6  ;;  %2242 = vmatpush3.bf16.msra.mxu0 %v2444_v11  ;;  %v1210_v6 = vshll.u32 %v2024_v56, 16  ;;  %v1490_v11 = vrot.slane %v2770_v16, 1  ;;  %v1059_v16 = vor.u32 %v1057_v9, %v1055_v4  ;;  %v351_v36 = vlaneseq }
  0x69   : > { %2211 = vmatprep.subr.bf16.mxu1 %v2447_v20  ;;  %2243 = vmatprep.subr.bf16.mxu0 %v2449_v22 }
  0x6a   : > { %v1212_v5 = vrot.slane %v1210_v6, 1  ;;  %v1491_v26 = vsel %vm1375_vm10, %v1489_v14, %v1490_v11  ;;  %v1064_v35 = vsel %vm888_vm9, %v1059_v16, %v1063_v24  ;;  %v1493_v45 = vsel %vm1375_vm10, %v1490_v11, %v1492_v34 }
  0x6b   : > { %2188 = vmatmul.mubr.msk.bf16.gmra.mrb[4].mxu0 %vm526_vm8, %v1992_v39  ;;  %2204 = vmatmul.mubr.msk.bf16.gmra.mrb[12].mxu1 %vm526_vm8, %v924_v44  ;;  %v2460_v39 = vld [vmem:[#allocation3 + $0xf8] sm:$0xff]   ;;  %v2468_v44 = vld [vmem:[#allocation3 + $0x110] sm:$0xff]  }
  0x6c   : > { %2212 = vmatpush3.bf16.msra.mxu1 %v2447_v20  ;;  %2244 = vmatpush3.bf16.msra.mxu0 %v2449_v22  ;;  %v348_v20 = vld [vmem:[#allocation2 + $0x28] sm:$0xf]  ;;  %v2895_v22 = vld [vmem:[#allocation2 + $0x18] sm:$0xff]  }
  0x6d   : > { %2213 = vmatprep.subr.bf16.mxu1 %v2450_v31  ;;  %2245 = vmatprep.subr.bf16.mxu0 %v2451_v13  ;;  %v349_v23 = vsel %vm2734_vm7, 0, %v348_v20  ;;  %v1223_v33 = vshll.u32 %v2895_v22, 16 }
  0x6e   : > { %2247 = vmatprep.mubr.msk.bf16.mxu0 %vm526_vm8, %v1378_v30  ;;  %2215 = vmatprep.mubr.msk.bf16.mxu1 %vm526_vm8, %v1042_v54  ;;  %350 = vst [vmem:[#allocation2 + $0x28] sm:$0xf] %v349_v23  ;;  %v2464_v30 = vld [vmem:[#allocation3 + $0x100] sm:$0xff]   ;;  %v1235_v54 = vshrl.u32 %v2902_v32, 16 }
  0x6f   : > { %v1225_v28 = vrot.slane %v1223_v33, 1  ;;  %v352_v33 = vshrl.u32 %v351_v36, 7 }
  0x70   : > { %2214 = vmatpush3.bf16.msra.mxu1 %v2450_v31  ;;  %2246 = vmatpush3.bf16.msra.mxu0 %v2451_v13  ;;  %v2457_v31 = vld [vmem:[#allocation3 + $0xf0] sm:$0xff]   ;;  %v1213_v13 = vor.u32 %v1212_v5, %v1208_v18  ;;  %v1237_v60 = vor.u32 %v1235_v54, %v1233_v51 }
  0x71   : > { %2223 = vmatprep.subr.bf16.mxu1 %v2852_v37  ;;  %2255 = vmatprep.subr.bf16.mxu0 %v2454_v41  ;;  %v1226_v52 = vsel %vm888_vm9, %v1221_v38, %v1225_v28  ;;  %v2942_v42 = vadd.s32 48, %v352_v33  ;;  %v2944_v43 = vadd.s32 32, %v352_v33  ;;  %v2946_v38 = vadd.s32 56, %v352_v33 }
  0x72   : > { %v1218_v40 = vsel %vm888_vm9, %v1213_v13, %v1217_v29 }
  0x73   : > { %2248 = vmatmul.mubr.msk.bf16.vlgmr.msra.gmra.mrb[8].mxu0 %vm526_vm8, %v1380_v55  ;;  %2216 = vmatmul.mubr.msk.bf16.vlgmr.msra.gmra.mrb[8].mxu1 %vm526_vm8, %v1049_v7  ;;  %v2470_v55 = vld [vmem:[#allocation3 + $0x118] sm:$0xff]   ;;  %v392_v54 = vand.u32 7, %v2944_v43 }
  0x74   : > { %2256 = vmatpush3.bf16.msra.mxu0 %v2454_v41  ;;  %2251 = vmatprep.mubr.msk.bf16.mxu0 %vm526_vm8, %v1382_v63  ;;  %v1227_v41 = vshrl.u32 %v2895_v22, 16  ;;  %v1615_v63 = vrot.slane %v2895_v22, 1 }
  0x75   : > { %2257 = vmatprep.subr.bf16.mxu0 %v2456_v62  ;;  %2224 = vmatpush3.bf16.msra.mxu1 %v2852_v37  ;;  %v1494_v37 = vrot.slane %v2811_v49, 1  ;;  %v2466_v49 = vld [vmem:[#allocation3 + $0x108] sm:$0xff]   ;;  %v2469_v47 = vld [vmem:[#allocation2 + $0x28] ss:$0 sps:$4 sm:$0x11]   ;;  %vm1734_vm0 = vcmp.eq.s32.totalorder %v392_v54, 0 }
  0x76   : > { %2219 = vmatprep.mubr.msk.bf16.mxu1 %vm526_vm8, %v1056_v15  ;;  %2225 = vmatprep.subr.bf16.mxu1 %v2455_v12  ;;  %v1229_v50 = vor.u32 %v1227_v41, %v1225_v28  ;;  %v1239_v56 = vshll.u32 %v2469_v47, 16  ;;  %v1618_v3 = vsel %vm1375_vm10, %v1615_v63, %v1617_v1  ;;  %v1616_v4 = vsel %vm1375_vm10, %v1613_v27, %v1615_v63 }
  0x77   : > { %v1495_v46 = vsel %vm1375_vm10, %v1492_v34, %v1494_v37  ;;  %v1497_v59 = vsel %vm1375_vm10, %v1494_v37, %v1496_v53  ;;  %v1619_v0 = vrot.slane %v2469_v47, 1  ;;  %v354_v34 = vadd.s32 16, %v352_v33 }
  0x78   : > { %2258 = vmatpush3.bf16.msra.mxu0 %v2456_v62  ;;  %v1234_v58 = vsel %vm888_vm9, %v1229_v50, %v1233_v51  ;;  %v1241_v61 = vrot.slane %v1239_v56, 1  ;;  %v1614_v62 = vsel %vm1375_vm10, %v1612_v57, %v1613_v27  ;;  %v353_v37 = vadd.s32 8, %v352_v33 }
  0x79   : > { %2259 = vmatprep.subr.bf16.mxu0 %v2459_v17  ;;  %2226 = vmatpush3.bf16.msra.mxu1 %v2455_v12  ;;  %v1620_v6 = vsel %vm1375_vm10, %v1617_v1, %v1619_v0  ;;  %v406_v50 = vand.u32 7, %v2942_v42 }
  0x7a   : > { %2227 = vmatprep.subr.bf16.mxu1 %v2457_v31  ;;  %v1242_v2 = vsel %vm888_vm9, %v1237_v60, %v1241_v61  ;;  %v371_v41 = vand.u32 7, %v353_v37 }
  0x7b   : > { %2252 = vmatmul.mubr.msk.bf16.gmra.mrb[12].mxu0 %vm526_vm8, %v1384_v21  ;;  %2220 = vmatmul.mubr.msk.bf16.gmra.mrb[12].mxu1 %vm526_vm8, %v1064_v35  ;;  %v355_v35 = vadd.s32 24, %v352_v33  ;;  %vm1736_vm15 = vcmp.eq.s32.totalorder %v406_v50, 0  ;;  %vm2966_vm7 = vcmp.eq.s32.totalorder %v406_v50, 7 }
  0x7c   : > { %2260 = vmatpush3.bf16.msra.mxu0 %v2459_v17  ;;  %2263 = vmatprep.mubr.msk.bf16.mxu0 %vm526_vm8, %v1491_v26  ;;  %vm1731_vm14 = vcmp.eq.s32.totalorder %v371_v41, 0  ;;  %vm1771_vm6 = vcmp.eq.s32.totalorder %v371_v41, 7 }
  0x7d   : > { %2261 = vmatprep.subr.bf16.mxu0 %v2461_v25  ;;  %2228 = vmatpush3.bf16.msra.mxu1 %v2457_v31 }
  0x7e   : > { %2231 = vmatprep.mubr.msk.bf16.mxu1 %vm526_vm8, %v1218_v40  ;;  %2229 = vmatprep.subr.bf16.mxu1 %v2460_v39  ;;  %v364_v40 = vand.u32 7, %v352_v33 }
  0x80   : > { %2262 = vmatpush3.bf16.msra.mxu0 %v2461_v25  ;;  %vm1730_vm12 = vcmp.eq.s32.totalorder %v364_v40, 0  ;;  %vm1770_vm4 = vcmp.eq.s32.totalorder %v364_v40, 7 }
  0x81   : > { %2271 = vmatprep.subr.bf16.mxu0 %v2464_v30  ;;  %2230 = vmatpush3.bf16.msra.mxu1 %v2460_v39  ;;  %v378_v39 = vand.u32 7, %v354_v34 }
  0x82   : > { %2287 = vmatprep.subr.bf16.mxu1 %v2464_v30 }
  0x83   : > { %2264 = vmatmul.mubr.msk.bf16.vlgmr.msra.gmra.mrb[8].mxu0 %vm526_vm8, %v1493_v45  ;;  %vm1732_vm11 = vcmp.eq.s32.totalorder %v378_v39, 0  ;;  %vm2954_vm3 = vcmp.eq.s32.totalorder %v378_v39, 7 }
  0x84   : > { %2272 = vmatpush3.bf16.msra.mxu0 %v2464_v30  ;;  %2267 = vmatprep.mubr.msk.bf16.mxu0 %vm526_vm8, %v1495_v46 }
  0x85   : > { %2273 = vmatprep.subr.bf16.mxu0 %v2466_v49  ;;  %2232 = vmatmul.mubr.msk.bf16.vlgmr.msra.gmra.mrb[8].mxu1 %vm526_vm8, %v1226_v52 }
  0x86   : > { %2291 = vmatpush3.bf16.msra.mxu1 %v2464_v30  ;;  %2235 = vmatprep.mubr.msk.bf16.mxu1 %vm526_vm8, %v1234_v58  ;;  %v385_v30 = vand.u32 7, %v355_v35 }
  0x87   : > { %2288 = vmatprep.subr.bf16.mxu1 %v2466_v49 }
  0x88   : > { %2274 = vmatpush3.bf16.msra.mxu0 %v2466_v49  ;;  %vm1733_vm13 = vcmp.eq.s32.totalorder %v385_v30, 0  ;;  %vm1773_vm5 = vcmp.eq.s32.totalorder %v385_v30, 7 }
  0x89   : > { %2275 = vmatprep.subr.bf16.mxu0 %v2468_v44 }
  0x8a   : > { %2292 = vmatpush3.bf16.msra.mxu1 %v2466_v49  ;;  %v2948_v49 = vadd.s32 40, %v352_v33 }
  0x8b   : > { %2268 = vmatmul.mubr.msk.bf16.gmra.mrb[12].mxu0 %vm526_vm8, %v1497_v59  ;;  %2289 = vmatprep.subr.bf16.mxu1 %v2468_v44 }
  0x8c   : > { %2276 = vmatpush3.bf16.msra.mxu0 %v2468_v44  ;;  %2279 = vmatprep.mubr.msk.bf16.mxu0 %vm526_vm8, %v1614_v62  ;;  %v399_v61 = vand.u32 7, %v2948_v49 }
  0x8d   : > { %2277 = vmatprep.subr.bf16.mxu0 %v2470_v55  ;;  %2236 = vmatmul.mubr.msk.bf16.gmra.mrb[12].mxu1 %vm526_vm8, %v1242_v2 }
  0x8e   : > { %2293 = vmatpush3.bf16.msra.mxu1 %v2468_v44  ;;  %2283 = vmatprep.mubr.msk.bf16.mxu1 %vm526_vm8, %v1618_v3  ;;  %v413_v44 = vand.u32 7, %v2946_v38  ;;  %vm1735_vm2 = vcmp.eq.s32.totalorder %v399_v61, 0  ;;  %vm1775_vm10 = vcmp.eq.s32.totalorder %v399_v61, 7 }
  0x8f   : > { %2290 = vmatprep.subr.bf16.mxu1 %v2470_v55 }
  0x90   : > { %2278 = vmatpush3.bf16.msra.mxu0 %v2470_v55  ;;  %vm1737_vm1 = vcmp.eq.s32.totalorder %v413_v44, 0  ;;  %vm2974_vm9 = vcmp.eq.s32.totalorder %v413_v44, 7 }
  0x92   : > { %2294 = vmatpush3.bf16.msra.mxu1 %v2470_v55 }
  0x93   : > { %2280 = vmatmul.mubr.msk.bf16.vlgmr.msra.gmra.mrb[8].mxu0 %vm526_vm8, %v1616_v4 }
  0x95   : > { %2284 = vmatmul.mubr.msk.bf16.vlgmr.msra.gmra.mrb[16].mxu1 %vm526_vm8, %v1620_v6  ;;  %vm2970_vm8 = vcmp.eq.s32.totalorder %v392_v54, 7 }
 0x126   : > { %v2153_v7 = vpop.f32.mrb[0].mxu1 }
 0x127   : > { %v573_v8 = vpop.f32.mrb[1].mxu1 }
 0x128   : > { %v2154_v9 = vpop.f32.mrb[2].mxu1 }
 0x129   : > { %v576_v10 = vpop.f32.mrb[3].mxu1 }
 0x12e   : > { %v2157_v14 = vpop.f32.mrb[4].mxu1 }
 0x12f   : > { %v589_v11 = vpop.f32.mrb[5].mxu1 }
 0x130   : > { %v2158_v12 = vpop.f32.mrb[6].mxu1 }
 0x131   : > { %v592_v15 = vpop.f32.mrb[7].mxu1 }
 0x136   : > { %v2185_v17 = vpop.f32.mrb[0].mxu0 }
 0x137   : > { %v2295_v18 = vadd.f32 %v2185_v17, %v2153_v7  ;;  %v818_v5 = vpop.f32.mrb[1].mxu0  ;;  %v2064_v17 = vld [vmem:[%s3053_s2] ss:$0 sm:$0xff] }
 0x138   : > { %v2296_v19 = vadd.f32 %v818_v5, %v573_v8  ;;  %v2186_v20 = vpop.f32.mrb[2].mxu0 }
 0x139   : > { %v2297_v21 = vadd.f32 %v2186_v20, %v2154_v9  ;;  %v821_v22 = vpop.f32.mrb[3].mxu0  ;;  %v1756_v45 = vsel %vm1732_vm11, 0.0, %v2295_v18 }
 0x13a   : > { %v2298_v23 = vadd.f32 %v821_v22, %v576_v10  ;;  %v1754_v48 = vsel %vm1730_vm12, 0.0, %v2296_v19 }
 0x13b   : > { %v1757_v53 = vsel %vm1733_vm13, 0.0, %v2297_v21 }
 0x13c   : > { %v1755_v27 = vsel %vm1731_vm14, 0.0, %v2298_v23 }
 0x13e   : > { %v2189_v16 = vpop.f32.mrb[4].mxu0 }
 0x13f   : > { %v2299_v24 = vadd.f32 %v2189_v16, %v2157_v14  ;;  %v834_v25 = vpop.f32.mrb[5].mxu0 }
 0x140   : > { %v2300_v26 = vadd.f32 %v834_v25, %v589_v11  ;;  %v2190_v31 = vpop.f32.mrb[6].mxu0 }
 0x141   : > { %v2301_v13 = vadd.f32 %v2190_v31, %v2158_v12  ;;  %v837_v29 = vpop.f32.mrb[7].mxu0  ;;  %v1760_v1 = vsel %vm1736_vm15, 0.0, %v2299_v24 }
 0x142   : > { %v2302_v32 = vadd.f32 %v837_v29, %v592_v15  ;;  %v1758_v4 = vsel %vm1734_vm0, 0.0, %v2300_v26 }
 0x143   : > { %v1761_v8 = vsel %vm1737_vm1, 0.0, %v2301_v13 }
 0x144   : > { %v1759_v14 = vsel %vm1735_vm2, 0.0, %v2302_v32 }
 0x158   : > { %v2233_v28 = vpop.f32.mrb[8].mxu1 }
 0x159   : > { %v1764_v46 = vadd.f32 %v2233_v28, %v1756_v45  ;;  %v1313_v47 = vpop.f32.mrb[9].mxu1 }
 0x15a   : > { %v1762_v51 = vadd.f32 %v1754_v48, %v1313_v47  ;;  %v2234_v52 = vpop.f32.mrb[10].mxu1 }
 0x15b   : > { %v1765_v56 = vadd.f32 %v2234_v52, %v1757_v53  ;;  %v1316_v57 = vpop.f32.mrb[11].mxu1 }
 0x15c   : > { %v1763_v59 = vadd.f32 %v1755_v27, %v1316_v57 }
 0x15e   : > { %v2269_v58 = vpop.f32.mrb[12].mxu0 }
 0x15f   : > { %v1584_v60 = vpop.f32.mrb[13].mxu0 }
 0x160   : > { %v2270_v55 = vpop.f32.mrb[14].mxu0  ;;  %v2237_v63 = vpop.f32.mrb[12].mxu1 }
 0x161   : > { %v1587_v62 = vpop.f32.mrb[15].mxu0  ;;  %v1768_v2 = vadd.f32 %v2237_v63, %v1760_v1  ;;  %v1329_v3 = vpop.f32.mrb[13].mxu1 }
 0x162   : > { %v1766_v6 = vadd.f32 %v1758_v4, %v1329_v3  ;;  %v2238_v7 = vpop.f32.mrb[14].mxu1 }
 0x163   : > { %v1769_v9 = vadd.f32 %v2238_v7, %v1761_v8  ;;  %v1332_v10 = vpop.f32.mrb[15].mxu1 }
 0x164   : > { %v1767_v12 = vadd.f32 %v1759_v14, %v1332_v10 }
 0x166   : > { %v2281_v11 = vpop.f32.mrb[8].mxu0 }
 0x167   : > { %v1796_v15 = vsel %vm2954_vm3, 0.0, %v2281_v11  ;;  %v1691_v18 = vpop.f32.mrb[9].mxu0 }
 0x168   : > { %v1804_v5 = vadd.f32 %v1796_v15, %v1764_v46  ;;  %v1794_v19 = vsel %vm1770_vm4, 0.0, %v1691_v18  ;;  %v2282_v20 = vpop.f32.mrb[10].mxu0  ;;  %v2285_v26 = vpop.f32.mrb[16].mxu1 }
 0x169   : > { %v1802_v21 = vadd.f32 %v1794_v19, %v1762_v51  ;;  %v1797_v22 = vsel %vm1773_vm5, 0.0, %v2282_v20  ;;  %v1694_v23 = vpop.f32.mrb[11].mxu0  ;;  %v2303_v36 = vadd.f32 %v2285_v26, %v2269_v58  ;;  %v1707_v33 = vpop.f32.mrb[17].mxu1 }
 0x16a   : > { %v1819_v16 = vadd.f32 %v2064_v17, %v1804_v5  ;;  %v1805_v24 = vadd.f32 %v1797_v22, %v1765_v56  ;;  %v1795_v25 = vsel %vm1771_vm6, 0.0, %v1694_v23  ;;  %v2304_v39 = vadd.f32 %v1707_v33, %v1584_v60  ;;  %v2286_v40 = vpop.f32.mrb[18].mxu1 }
 0x16b   : > { %v1817_v13 = vadd.f32 %v2064_v17, %v1802_v21  ;;  %v1803_v29 = vadd.f32 %v1795_v25, %v1763_v59  ;;  %v1800_v42 = vsel %vm2966_vm7, 0.0, %v2303_v36  ;;  %v2305_v38 = vadd.f32 %v2286_v40, %v2270_v55  ;;  %v1710_v28 = vpop.f32.mrb[19].mxu1 }
 0x16c   : > { %v1827_v32 = vmax.f32 %v1819_v16, 0.0  ;;  %v1820_v35 = vadd.f32 %v2064_v17, %v1805_v24  ;;  %v1808_v45 = vadd.f32 %v1800_v42, %v1768_v2  ;;  %v1798_v49 = vsel %vm2970_vm8, 0.0, %v2304_v39 }
 0x16d   : > { %v1825_v37 = vmax.f32 %v1817_v13, 0.0  ;;  %v1818_v41 = vadd.f32 %v2064_v17, %v1803_v29  ;;  %v2306_v47 = vadd.f32 %v1710_v28, %v1587_v62  ;;  %v1806_v48 = vadd.f32 %v1798_v49, %v1766_v6 }
 0x16e   : > { %1835 = vst [vmem:[%s2978_s8 + $0x10] sm:$0xff] %v1827_v32  ;;  %v1828_v43 = vmax.f32 %v1820_v35, 0.0  ;;  %v1801_v50 = vsel %vm2974_vm9, 0.0, %v2305_v38  ;;  %v1823_v51 = vadd.f32 %v2064_v17, %v1808_v45 }
 0x16f   : > { %1833 = vst [vmem:[%s2978_s8] sm:$0xff] %v1825_v37  ;;  %v1826_v46 = vmax.f32 %v1818_v41, 0.0  ;;  %v1809_v52 = vadd.f32 %v1801_v50, %v1769_v9  ;;  %v1799_v53 = vsel %vm1775_vm10, 0.0, %v2306_v47  ;;  %v1821_v54 = vadd.f32 %v2064_v17, %v1806_v48 }
 0x170   : > { %1836 = vst [vmem:[%s2978_s8 + $0x18] sm:$0xff] %v1828_v43  ;;  %v1807_v56 = vadd.f32 %v1799_v53, %v1767_v12  ;;  %v1831_v57 = vmax.f32 %v1823_v51, 0.0 }
 0x171   : > { %1834 = vst [vmem:[%s2978_s8 + $0x8] sm:$0xff] %v1826_v46  ;;  %v1824_v27 = vadd.f32 %v2064_v17, %v1809_v52  ;;  %v1829_v58 = vmax.f32 %v1821_v54, 0.0 }
 0x172   : > { %v1822_v44 = vadd.f32 %v2064_v17, %v1807_v56  ;;  %1839 = vst [vmem:[%s2978_s8 + $0x30] sm:$0xff] %v1831_v57 }
 0x173   : > { %v1832_v59 = vmax.f32 %v1824_v27, 0.0  ;;  %1837 = vst [vmem:[%s2978_s8 + $0x20] sm:$0xff] %v1829_v58 }
 0x174   : > { %v1830_v60 = vmax.f32 %v1822_v44, 0.0 }
 0x175   : > { %1840 = vst [vmem:[%s2978_s8 + $0x38] sm:$0xff] %v1832_v59 }
 0x176   : > { %1838 = vst [vmem:[%s2978_s8 + $0x28] sm:$0xff] %v1830_v60 }
 0x177   : > { %2513 = shalt.err (!%p2510_p6)
}
 0x178   : > { %s2514_s27 = scalar_lea.hbm %s2996_s19, 1024  ;;  %s2518_s4 = scalar_lea.hbm %s3054_s3, 2048 }
 0x179   : > { %p2515_p7 = scmp.ne.s32.totalorder %s2996_s19, %s2514_s27  ;;  %p2519_p0 = scmp.lt.u32.totalorder %s2996_s19, %s3054_s3 }
 0x17a   : > { %p2520_p2 = scmp.lt.u32.totalorder %s2518_s4, %s2514_s27  ;;  %p2522_p8 = scmp.lt.u32.totalorder %s2514_s27, %s2996_s19 }
 0x17b   : > { %p2516_p9 = pnand %p2515_p7, %p3080_p10 }
 0x17c   : > { %p2521_p4 = por %p2520_p2, %p2519_p0 }
 0x17d   : > { %p2517_p12 = pneg %p2516_p9 }
 0x17e   : > { %p2523_p11 = por %p2522_p8, %p2521_p4 }
 0x180   : > { %p2524_p13 = pnand %p2523_p11, %p2517_p12 }
 0x182   : > { %2527 = shalt.err (!%p2524_p13)
}
 0x183   : > { %s2588_s7 = smov 128   ;;  %s2589_s8 = smov 8  }
 0x184   : > { %2347 = dma.vmem_to_hbm [thread:$0]  (%p3080_p10), %s2998_s10, 1024, %s2996_s19, %s3005_s15, %s2588_s7, %s2588_s7, %s2589_s8  }
 0x185 PF: > { %p2359_p1 = scmp.ge.s32.totalorder %s2582_s17, 2  ;;  %s1871_s9 = sand.u32 1, %s2562_s12  }
 0x186   : > { %p3081_p3 = scmp.ne.s32.totalorder %s3060_s24, 0  ;;  %s1872_s11 = scalar_lea.sflag [#allocation5], %s1871_s9 }
 0x188   : > { %p2354_p5 = pnand %p2359_p1, %p3081_p3 }
 0x18a   : > { %2557 = dma.done.wait (!%p2354_p5), %s1872_s11, 1024  }
 0x18b   : > { %2559 = vsyncadd (!%p2354_p5), %s1872_s11, 4294966272  ;;  %s17_s17 = sadd.s32 1, %s2582_s17   ;;  %s3082_s12 = smov %s2566_s13 }
 0x18c   : > { %p14_p6 = scmp.ge.s32.totalorder %s17_s17, 4   ;;  %s3083_s13 = smov %s2570_s14 }
 0x18d   : > { %s3084_s14 = smov %s2663_s25  ;;  %s3085_s15 = smov %s2578_s16 }
 0x18e   : > { %s3086_s16 = smov %s3088_s20  ;;  %16 = sbr.rel (!%p14_p6) target bundleno = 5 (0x5), region = 84 }
 0x195   :  { %1877 = vsyncpa [#allocation4], 1 }
 0x196   :  { %1879 = vsyncpa [#allocation4 + $0x1], 1 }
 0x197   :  { %1880 = vsyncpa [#allocation5], 1 }
 0x198   :  { %1882 = vsyncpa [#allocation5 + $0x1], 1 }

</bundles_post_ra>
